<compile_context>
chip_gen: v6e
topology: v6e:2x2x1
jax: 0.10.0
libtpu: 0.0.40
codegen_flags: <defaults>
</compile_context>

<pallas_src>
import functools

import jax
import jax.numpy as jnp
from jax import lax
from jax.experimental import pallas as pl
from jax.experimental.pallas import tpu as pltpu

IN_DIM, H1, H2, OUT_DIM = 10, 128, 512, 784
TEMPERATURE = 5.0


def _reverse_dist_kernel(y_ref, w1_ref, b1_ref, w2_ref, b2_ref, w3_ref, b3_ref,
                         u_ref, img_ref, proba_ref, *, k):
    # ---- one-shot 3-layer MLP (Linear + ReLU, x3) on the MXU ----------------
    h1 = jnp.maximum(
        jnp.dot(y_ref[...], w1_ref[...], preferred_element_type=jnp.float32)
        + b1_ref[...], 0.0)
    h2 = jnp.maximum(
        jnp.dot(h1, w2_ref[...], preferred_element_type=jnp.float32)
        + b2_ref[...], 0.0)
    proba = jnp.maximum(
        jnp.dot(h2, w3_ref[...], preferred_element_type=jnp.float32)
        + b3_ref[...], 0.0)
    proba_ref[...] = proba

    # ---- Gumbel-softmax sampling: k steps folded into one kernel ------------
    inv_t = jnp.float32(1.0 / TEMPERATURE)
    # k-invariant factor p^(1/T); proba == 0 -> log = -inf -> exp = 0.
    # (An all-zero proba row would NaN here, exactly as in the PyTorch module.)
    s = jnp.exp(jnp.log(proba) * inv_t)

    def body(i, acc):
        u = u_ref[i]                              # (B, OUT_DIM) uniforms [0,1)
        g = -jnp.log(-jnp.log(u))                 # Gumbel(0, 1) noise
        w = s * jnp.exp(g * inv_t)                # == exp((log p + g) / T)
        inv_denom = 1.0 / jnp.sum(w, axis=-1, keepdims=True)
        return acc + w * inv_denom                # softmax sample, accumulated

    unroll = True if k <= 8 else 8
    img_ref[...] = lax.fori_loop(
        0, k, body, jnp.zeros(img_ref.shape, jnp.float32), unroll=unroll)


def reverse_distribution_mnist(yonehot, params, *, k, key):
    """Returns (img, proba) — same semantics as the PyTorch module's forward."""
    w1, b1, w2, b2, w3, b3 = params
    B = yonehot.shape[0]
    # torch.rand_like(proba), one draw per sampling step.
    # TODO(synk): for large k, tile the noise along k with a grid axis
    # (resident img/proba outputs) instead of holding all (k, B, 784) in VMEM.
    u = jax.random.uniform(key, (k, B, OUT_DIM), dtype=jnp.float32)

    kernel = functools.partial(_reverse_dist_kernel, k=k)
    img, proba = pl.pallas_call(
        kernel,
        out_shape=(jax.ShapeDtypeStruct((B, OUT_DIM), jnp.float32),
                   jax.ShapeDtypeStruct((B, OUT_DIM), jnp.float32)),
        grid=(1,),
        in_specs=[
            pl.BlockSpec((B, IN_DIM), lambda i: (0, 0)),
            pl.BlockSpec((IN_DIM, H1), lambda i: (0, 0)),
            pl.BlockSpec((1, H1), lambda i: (0, 0)),
            pl.BlockSpec((H1, H2), lambda i: (0, 0)),
            pl.BlockSpec((1, H2), lambda i: (0, 0)),
            pl.BlockSpec((H2, OUT_DIM), lambda i: (0, 0)),
            pl.BlockSpec((1, OUT_DIM), lambda i: (0, 0)),
            pl.BlockSpec((k, B, OUT_DIM), lambda i: (0, 0, 0)),
        ],
        out_specs=(
            pl.BlockSpec((B, OUT_DIM), lambda i: (0, 0)),
            pl.BlockSpec((B, OUT_DIM), lambda i: (0, 0)),
        ),
        compiler_params=pltpu.CompilerParams(
            dimension_semantics=("arbitrary",)),
    )(yonehot, w1, b1, w2, b2, w3, b3, u)
    return img, proba


def init_params(key):
    """Deterministic init matching PyTorch nn.Linear defaults:
    U(-1/sqrt(fan_in), 1/sqrt(fan_in)) for weights and biases."""
    dims = [(IN_DIM, H1), (H1, H2), (H2, OUT_DIM)]
    params = []
    for (fan_in, fan_out) in dims:
        key, kw, kb = jax.random.split(key, 3)
        bound = 1.0 / jnp.sqrt(float(fan_in))
        w = jax.random.uniform(kw, (fan_in, fan_out), jnp.float32, -bound, bound)
        b = jax.random.uniform(kb, (1, fan_out), jnp.float32, -bound, bound)
        params.extend([w, b])
    return tuple(params)


def _mlp_reference(yonehot, params):
    w1, b1, w2, b2, w3, b3 = params
    hp = jax.lax.Precision.HIGHEST
    h1 = jax.nn.relu(jnp.dot(yonehot, w1, precision=hp) + b1)
    h2 = jax.nn.relu(jnp.dot(h1, w2, precision=hp) + b2)
    return jax.nn.relu(jnp.dot(h2, w3, precision=hp) + b3)


def _reparametrize_reference(proba, u, temperature=TEMPERATURE):
    """Plain-JAX transcription of the PyTorch reparametrize()."""
    img = jnp.zeros_like(proba)
    for i in range(u.shape[0]):
        g = -jnp.log(-jnp.log(u[i]))
        x = (jnp.log(proba) + g) / temperature
        img = img + jax.nn.softmax(x, axis=-1)
    return img


if __name__ == "__main__":
    root = jax.random.PRNGKey(0)
    k_param, k_label, k_noise = jax.random.split(root, 3)

    params = init_params(k_param)

    # Small example: batch of 8 one-hot class labels (10 classes), k = 4 samples.
    B, K = 8, 4
    labels = jax.random.randint(k_label, (B,), 0, IN_DIM)
    yonehot = jax.nn.one_hot(labels, IN_DIM, dtype=jnp.float32)

    img, proba = reverse_distribution_mnist(yonehot, params, k=K, key=k_noise)
    img = jax.block_until_ready(img)
    proba = jax.block_until_ready(proba)

    # MLP path matches a plain-JAX reference.
    proba_ref = _mlp_reference(yonehot, params)
    assert jnp.allclose(proba, proba_ref, atol=2e-3, rtol=2e-3), "proba mismatch"

    # Sampling path matches the log-space softmax reference with the same noise.
    u = jax.random.uniform(k_noise, (K, B, OUT_DIM), dtype=jnp.float32)
    img_ref = _reparametrize_reference(proba, u)
    assert jnp.allclose(img, img_ref, atol=1e-3, rtol=1e-3), "img mismatch"

    # Each Gumbel-softmax sample sums to 1 over dim=-1, so img rows sum to ~K.
    assert img.shape == (B, OUT_DIM) and proba.shape == (B, OUT_DIM)
    assert bool(jnp.all(jnp.isfinite(img)))
    assert bool(jnp.all(jnp.abs(jnp.sum(img, axis=-1) - K) < 1e-2))

    print("KERNEL_OK")
</pallas_src>

<mosaic_0001>
module attributes {stable_mosaic.version = 11 : i64} {
  func.func @_reverse_dist_kernel(%arg0: i32, %arg1: memref<8x10xf32, #tpu.memory_space<vmem>>, %arg2: memref<10x128xf32, #tpu.memory_space<vmem>>, %arg3: memref<1x128xf32, #tpu.memory_space<vmem>>, %arg4: memref<128x512xf32, #tpu.memory_space<vmem>>, %arg5: memref<1x512xf32, #tpu.memory_space<vmem>>, %arg6: memref<512x784xf32, #tpu.memory_space<vmem>>, %arg7: memref<1x784xf32, #tpu.memory_space<vmem>>, %arg8: memref<4x8x784xf32, #tpu.memory_space<vmem>>, %arg9: memref<8x784xf32, #tpu.memory_space<vmem>>, %arg10: memref<8x784xf32, #tpu.memory_space<vmem>>) attributes {dimension_semantics = [#tpu.dimension_semantics<arbitrary>], iteration_bounds = array<i64: 1>, scalar_prefetch = 0 : i64, scratch_operands = 0 : i64, tpu.core_type = #tpu.core_type<tc>, window_params = [{pipeline_mode = #tpu.pipeline_mode<synchronous>, transform_indices = @transform_0, window_bounds = array<i64: 8, 10>}, {pipeline_mode = #tpu.pipeline_mode<synchronous>, transform_indices = @transform_1, window_bounds = array<i64: 10, 128>}, {pipeline_mode = #tpu.pipeline_mode<synchronous>, transform_indices = @transform_2, window_bounds = array<i64: 1, 128>}, {pipeline_mode = #tpu.pipeline_mode<synchronous>, transform_indices = @transform_3, window_bounds = array<i64: 128, 512>}, {pipeline_mode = #tpu.pipeline_mode<synchronous>, transform_indices = @transform_4, window_bounds = array<i64: 1, 512>}, {pipeline_mode = #tpu.pipeline_mode<synchronous>, transform_indices = @transform_5, window_bounds = array<i64: 512, 784>}, {pipeline_mode = #tpu.pipeline_mode<synchronous>, transform_indices = @transform_6, window_bounds = array<i64: 1, 784>}, {pipeline_mode = #tpu.pipeline_mode<synchronous>, transform_indices = @transform_7, window_bounds = array<i64: 4, 8, 784>}, {pipeline_mode = #tpu.pipeline_mode<synchronous>, transform_indices = @transform_8, window_bounds = array<i64: 8, 784>}, {pipeline_mode = #tpu.pipeline_mode<synchronous>, transform_indices = @transform_9, window_bounds = array<i64: 8, 784>}]} {
    %c0 = arith.constant 0 : index
    %c0_0 = arith.constant 0 : index
    %0 = vector.load %arg1[%c0, %c0_0] : memref<8x10xf32, #tpu.memory_space<vmem>>, vector<8x10xf32>
    %c0_1 = arith.constant 0 : index
    %c0_2 = arith.constant 0 : index
    %1 = vector.load %arg2[%c0_1, %c0_2] : memref<10x128xf32, #tpu.memory_space<vmem>>, vector<10x128xf32>
    %cst = arith.constant dense<0.000000e+00> : vector<8x128xf32>
    %2 = tpu.matmul %0, %1, %cst {dimension_numbers = #tpu.dot_dimension_numbers<[1], [0], [0], [1], [0, 0, 1, 1], [], []>} : vector<8x10xf32>, vector<10x128xf32>, vector<8x128xf32> -> vector<8x128xf32>
    %c0_3 = arith.constant 0 : index
    %c0_4 = arith.constant 0 : index
    %3 = vector.load %arg3[%c0_3, %c0_4] : memref<1x128xf32, #tpu.memory_space<vmem>>, vector<1x128xf32>
    %4 = vector.broadcast %3 : vector<1x128xf32> to vector<8x128xf32>
    %5 = arith.addf %2, %4 : vector<8x128xf32>
    %cst_5 = arith.constant 0.000000e+00 : f32
    %6 = vector.broadcast %cst_5 : f32 to vector<8x128xf32>
    %7 = arith.maximumf %5, %6 : vector<8x128xf32>
    %c0_6 = arith.constant 0 : index
    %c0_7 = arith.constant 0 : index
    %8 = vector.load %arg4[%c0_6, %c0_7] : memref<128x512xf32, #tpu.memory_space<vmem>>, vector<128x512xf32>
    %cst_8 = arith.constant dense<0.000000e+00> : vector<8x512xf32>
    %9 = tpu.matmul %7, %8, %cst_8 {dimension_numbers = #tpu.dot_dimension_numbers<[1], [0], [0], [1], [0, 0, 1, 1], [], []>} : vector<8x128xf32>, vector<128x512xf32>, vector<8x512xf32> -> vector<8x512xf32>
    %c0_9 = arith.constant 0 : index
    %c0_10 = arith.constant 0 : index
    %10 = vector.load %arg5[%c0_9, %c0_10] : memref<1x512xf32, #tpu.memory_space<vmem>>, vector<1x512xf32>
    %11 = vector.broadcast %10 : vector<1x512xf32> to vector<8x512xf32>
    %12 = arith.addf %9, %11 : vector<8x512xf32>
    %cst_11 = arith.constant 0.000000e+00 : f32
    %13 = vector.broadcast %cst_11 : f32 to vector<8x512xf32>
    %14 = arith.maximumf %12, %13 : vector<8x512xf32>
    %c0_12 = arith.constant 0 : index
    %c0_13 = arith.constant 0 : index
    %15 = vector.load %arg6[%c0_12, %c0_13] : memref<512x784xf32, #tpu.memory_space<vmem>>, vector<512x784xf32>
    %cst_14 = arith.constant dense<0.000000e+00> : vector<8x784xf32>
    %16 = tpu.matmul %14, %15, %cst_14 {dimension_numbers = #tpu.dot_dimension_numbers<[1], [0], [0], [1], [0, 0, 1, 1], [], []>} : vector<8x512xf32>, vector<512x784xf32>, vector<8x784xf32> -> vector<8x784xf32>
    %c0_15 = arith.constant 0 : index
    %c0_16 = arith.constant 0 : index
    %17 = vector.load %arg7[%c0_15, %c0_16] : memref<1x784xf32, #tpu.memory_space<vmem>>, vector<1x784xf32>
    %18 = vector.broadcast %17 : vector<1x784xf32> to vector<8x784xf32>
    %19 = arith.addf %16, %18 : vector<8x784xf32>
    %cst_17 = arith.constant 0.000000e+00 : f32
    %20 = vector.broadcast %cst_17 : f32 to vector<8x784xf32>
    %21 = arith.maximumf %19, %20 : vector<8x784xf32>
    %c0_18 = arith.constant 0 : index
    %c0_19 = arith.constant 0 : index
    %22 = vector.load %arg10[%c0_18, %c0_19] : memref<8x784xf32, #tpu.memory_space<vmem>>, vector<8x784xf32>
    tpu.vector_store %arg10[%c0_18, %c0_19], %21 {strides = array<i32>} : memref<8x784xf32, #tpu.memory_space<vmem>>, vector<8x784xf32>,
    %23 = math.log %21 : vector<8x784xf32>
    %cst_20 = arith.constant 2.000000e-01 : f32
    %24 = vector.broadcast %cst_20 : f32 to vector<8x784xf32>
    %25 = arith.mulf %23, %24 : vector<8x784xf32>
    %26 = math.exp %25 : vector<8x784xf32>
    %cst_21 = arith.constant 0.000000e+00 : f32
    %27 = vector.broadcast %cst_21 : f32 to vector<8x784xf32>
    %cst_22 = arith.constant 2.000000e-01 : f32
    %c0_i32 = arith.constant 0 : i32
    %28 = arith.index_cast %c0_i32 : i32 to index
    %c0_23 = arith.constant 0 : index
    %c0_24 = arith.constant 0 : index
    %29 = vector.load %arg8[%28, %c0_23, %c0_24] : memref<4x8x784xf32, #tpu.memory_space<vmem>>, vector<1x8x784xf32>
    %30 = vector.shape_cast %29 : vector<1x8x784xf32> to vector<8x784xf32>
    %31 = math.log %30 : vector<8x784xf32>
    %cst_25 = arith.constant 0.000000e+00 : f32
    %32 = vector.broadcast %cst_25 : f32 to vector<8x784xf32>
    %33 = arith.subf %32, %31 : vector<8x784xf32>
    %34 = math.log %33 : vector<8x784xf32>
    %cst_26 = arith.constant 0.000000e+00 : f32
    %35 = vector.broadcast %cst_26 : f32 to vector<8x784xf32>
    %36 = arith.subf %35, %34 : vector<8x784xf32>
    %37 = vector.broadcast %cst_22 : f32 to vector<8x784xf32>
    %38 = arith.mulf %36, %37 : vector<8x784xf32>
    %39 = math.exp %38 : vector<8x784xf32>
    %40 = arith.mulf %26, %39 : vector<8x784xf32>
    %cst_27 = arith.constant dense<0.000000e+00> : vector<8xf32>
    %41 = vector.multi_reduction <add>, %40, %cst_27 [1] : vector<8x784xf32> to vector<8xf32>
    %42 = vector.shape_cast %41 : vector<8xf32> to vector<8x1xf32>
    %cst_28 = arith.constant 1.000000e+00 : f32
    %43 = vector.broadcast %cst_28 : f32 to vector<8x1xf32>
    %44 = arith.divf %43, %42 : vector<8x1xf32>
    %45 = vector.broadcast %44 : vector<8x1xf32> to vector<8x784xf32>
    %46 = arith.mulf %40, %45 : vector<8x784xf32>
    %47 = arith.addf %27, %46 : vector<8x784xf32>
    %c1_i32 = arith.constant 1 : i32
    %48 = arith.index_cast %c1_i32 : i32 to index
    %c0_29 = arith.constant 0 : index
    %c0_30 = arith.constant 0 : index
    %49 = vector.load %arg8[%48, %c0_29, %c0_30] : memref<4x8x784xf32, #tpu.memory_space<vmem>>, vector<1x8x784xf32>
    %50 = vector.shape_cast %49 : vector<1x8x784xf32> to vector<8x784xf32>
    %51 = math.log %50 : vector<8x784xf32>
    %cst_31 = arith.constant 0.000000e+00 : f32
    %52 = vector.broadcast %cst_31 : f32 to vector<8x784xf32>
    %53 = arith.subf %52, %51 : vector<8x784xf32>
    %54 = math.log %53 : vector<8x784xf32>
    %cst_32 = arith.constant 0.000000e+00 : f32
    %55 = vector.broadcast %cst_32 : f32 to vector<8x784xf32>
    %56 = arith.subf %55, %54 : vector<8x784xf32>
    %57 = vector.broadcast %cst_22 : f32 to vector<8x784xf32>
    %58 = arith.mulf %56, %57 : vector<8x784xf32>
    %59 = math.exp %58 : vector<8x784xf32>
    %60 = arith.mulf %26, %59 : vector<8x784xf32>
    %cst_33 = arith.constant dense<0.000000e+00> : vector<8xf32>
    %61 = vector.multi_reduction <add>, %60, %cst_33 [1] : vector<8x784xf32> to vector<8xf32>
    %62 = vector.shape_cast %61 : vector<8xf32> to vector<8x1xf32>
    %cst_34 = arith.constant 1.000000e+00 : f32
    %63 = vector.broadcast %cst_34 : f32 to vector<8x1xf32>
    %64 = arith.divf %63, %62 : vector<8x1xf32>
    %65 = vector.broadcast %64 : vector<8x1xf32> to vector<8x784xf32>
    %66 = arith.mulf %60, %65 : vector<8x784xf32>
    %67 = arith.addf %47, %66 : vector<8x784xf32>
    %c2_i32 = arith.constant 2 : i32
    %68 = arith.index_cast %c2_i32 : i32 to index
    %c0_35 = arith.constant 0 : index
    %c0_36 = arith.constant 0 : index
    %69 = vector.load %arg8[%68, %c0_35, %c0_36] : memref<4x8x784xf32, #tpu.memory_space<vmem>>, vector<1x8x784xf32>
    %70 = vector.shape_cast %69 : vector<1x8x784xf32> to vector<8x784xf32>
    %71 = math.log %70 : vector<8x784xf32>
    %cst_37 = arith.constant 0.000000e+00 : f32
    %72 = vector.broadcast %cst_37 : f32 to vector<8x784xf32>
    %73 = arith.subf %72, %71 : vector<8x784xf32>
    %74 = math.log %73 : vector<8x784xf32>
    %cst_38 = arith.constant 0.000000e+00 : f32
    %75 = vector.broadcast %cst_38 : f32 to vector<8x784xf32>
    %76 = arith.subf %75, %74 : vector<8x784xf32>
    %77 = vector.broadcast %cst_22 : f32 to vector<8x784xf32>
    %78 = arith.mulf %76, %77 : vector<8x784xf32>
    %79 = math.exp %78 : vector<8x784xf32>
    %80 = arith.mulf %26, %79 : vector<8x784xf32>
    %cst_39 = arith.constant dense<0.000000e+00> : vector<8xf32>
    %81 = vector.multi_reduction <add>, %80, %cst_39 [1] : vector<8x784xf32> to vector<8xf32>
    %82 = vector.shape_cast %81 : vector<8xf32> to vector<8x1xf32>
    %cst_40 = arith.constant 1.000000e+00 : f32
    %83 = vector.broadcast %cst_40 : f32 to vector<8x1xf32>
    %84 = arith.divf %83, %82 : vector<8x1xf32>
    %85 = vector.broadcast %84 : vector<8x1xf32> to vector<8x784xf32>
    %86 = arith.mulf %80, %85 : vector<8x784xf32>
    %87 = arith.addf %67, %86 : vector<8x784xf32>
    %c3_i32 = arith.constant 3 : i32
    %88 = arith.index_cast %c3_i32 : i32 to index
    %c0_41 = arith.constant 0 : index
    %c0_42 = arith.constant 0 : index
    %89 = vector.load %arg8[%88, %c0_41, %c0_42] : memref<4x8x784xf32, #tpu.memory_space<vmem>>, vector<1x8x784xf32>
    %90 = vector.shape_cast %89 : vector<1x8x784xf32> to vector<8x784xf32>
    %91 = math.log %90 : vector<8x784xf32>
    %cst_43 = arith.constant 0.000000e+00 : f32
    %92 = vector.broadcast %cst_43 : f32 to vector<8x784xf32>
    %93 = arith.subf %92, %91 : vector<8x784xf32>
    %94 = math.log %93 : vector<8x784xf32>
    %cst_44 = arith.constant 0.000000e+00 : f32
    %95 = vector.broadcast %cst_44 : f32 to vector<8x784xf32>
    %96 = arith.subf %95, %94 : vector<8x784xf32>
    %97 = vector.broadcast %cst_22 : f32 to vector<8x784xf32>
    %98 = arith.mulf %96, %97 : vector<8x784xf32>
    %99 = math.exp %98 : vector<8x784xf32>
    %100 = arith.mulf %26, %99 : vector<8x784xf32>
    %cst_45 = arith.constant dense<0.000000e+00> : vector<8xf32>
    %101 = vector.multi_reduction <add>, %100, %cst_45 [1] : vector<8x784xf32> to vector<8xf32>
    %102 = vector.shape_cast %101 : vector<8xf32> to vector<8x1xf32>
    %cst_46 = arith.constant 1.000000e+00 : f32
    %103 = vector.broadcast %cst_46 : f32 to vector<8x1xf32>
    %104 = arith.divf %103, %102 : vector<8x1xf32>
    %105 = vector.broadcast %104 : vector<8x1xf32> to vector<8x784xf32>
    %106 = arith.mulf %100, %105 : vector<8x784xf32>
    %107 = arith.addf %87, %106 : vector<8x784xf32>
    %c4_i32 = arith.constant 4 : i32
    %c0_47 = arith.constant 0 : index
    %c0_48 = arith.constant 0 : index
    %108 = vector.load %arg9[%c0_47, %c0_48] : memref<8x784xf32, #tpu.memory_space<vmem>>, vector<8x784xf32>
    tpu.vector_store %arg9[%c0_47, %c0_48], %107 {strides = array<i32>} : memref<8x784xf32, #tpu.memory_space<vmem>>, vector<8x784xf32>,
    return
  }
  func.func @transform_0(%arg0: i32) -> (i32, i32) {
    %c0_i32 = arith.constant 0 : i32
    %c0_i32_0 = arith.constant 0 : i32
    %c0_i32_1 = arith.constant 0 : i32
    return %c0_i32, %c0_i32_0 : i32, i32
  }
  func.func @transform_1(%arg0: i32) -> (i32, i32) {
    %c0_i32 = arith.constant 0 : i32
    %c0_i32_0 = arith.constant 0 : i32
    %c0_i32_1 = arith.constant 0 : i32
    return %c0_i32, %c0_i32_0 : i32, i32
  }
  func.func @transform_2(%arg0: i32) -> (i32, i32) {
    %c0_i32 = arith.constant 0 : i32
    %c0_i32_0 = arith.constant 0 : i32
    %c0_i32_1 = arith.constant 0 : i32
    return %c0_i32, %c0_i32_0 : i32, i32
  }
  func.func @transform_3(%arg0: i32) -> (i32, i32) {
    %c0_i32 = arith.constant 0 : i32
    %c0_i32_0 = arith.constant 0 : i32
    %c0_i32_1 = arith.constant 0 : i32
    return %c0_i32, %c0_i32_0 : i32, i32
  }
  func.func @transform_4(%arg0: i32) -> (i32, i32) {
    %c0_i32 = arith.constant 0 : i32
    %c0_i32_0 = arith.constant 0 : i32
    %c0_i32_1 = arith.constant 0 : i32
    return %c0_i32, %c0_i32_0 : i32, i32
  }
  func.func @transform_5(%arg0: i32) -> (i32, i32) {
    %c0_i32 = arith.constant 0 : i32
    %c0_i32_0 = arith.constant 0 : i32
    %c0_i32_1 = arith.constant 0 : i32
    return %c0_i32, %c0_i32_0 : i32, i32
  }
  func.func @transform_6(%arg0: i32) -> (i32, i32) {
    %c0_i32 = arith.constant 0 : i32
    %c0_i32_0 = arith.constant 0 : i32
    %c0_i32_1 = arith.constant 0 : i32
    return %c0_i32, %c0_i32_0 : i32, i32
  }
  func.func @transform_7(%arg0: i32) -> (i32, i32, i32) {
    %c0_i32 = arith.constant 0 : i32
    %c0_i32_0 = arith.constant 0 : i32
    %c0_i32_1 = arith.constant 0 : i32
    %c0_i32_2 = arith.constant 0 : i32
    return %c0_i32, %c0_i32_0, %c0_i32_1 : i32, i32, i32
  }
  func.func @transform_8(%arg0: i32) -> (i32, i32) {
    %c0_i32 = arith.constant 0 : i32
    %c0_i32_0 = arith.constant 0 : i32
    %c0_i32_1 = arith.constant 0 : i32
    return %c0_i32, %c0_i32_0 : i32, i32
  }
  func.func @transform_9(%arg0: i32) -> (i32, i32) {
    %c0_i32 = arith.constant 0 : i32
    %c0_i32_0 = arith.constant 0 : i32
    %c0_i32_1 = arith.constant 0 : i32
    return %c0_i32, %c0_i32_0 : i32, i32
  }
}

</mosaic_0001>

<bundles_post_ra>
// kernel: tpu_custom_call.1
= control target key start
LH: loop header
LB: loop body
LE: loop exit
PB: predicated region body
PF: predicated region fallthrough
CT: control target
= control target key end

     0   :  { %15 = vsyncpa [#allocation3], 0  ;;  %vm47_vm0 = vcmask 1041408   ;;  %v2257_v1 = vmov 0.0   ;;  %vm2258_vm1 = vmmov 0   ;;  %vm43_vm2 = vcmask 80896   ;;  %s4201_s0 = inlined_call_operand.vmem [shape: f32[8,10], index: 0, kind: input, shape index: {}]   ;;  %s4202_s1 = inlined_call_operand.vmem [shape: f32[10,128], index: 1, kind: input, shape index: {}]   ;;  %s4203_s2 = inlined_call_operand.vmem [shape: f32[1,128], index: 2, kind: input, shape index: {}]   ;;  %s4204_s3 = inlined_call_operand.vmem [shape: f32[128,512], index: 3, kind: input, shape index: {}]   ;;  %s4205_s4 = inlined_call_operand.vmem [shape: f32[1,512], index: 4, kind: input, shape index: {}]   ;;  %s4206_s5 = inlined_call_operand.vmem [shape: f32[512,784], index: 5, kind: input, shape index: {}]   ;;  %s4207_s6 = inlined_call_operand.vmem [shape: f32[1,784], index: 6, kind: input, shape index: {}]   ;;  %s4208_s7 = inlined_call_operand.vmem [shape: f32[4,8,784], index: 7, kind: input, shape index: {}]   ;;  %s4209_s8 = inlined_call_operand.hbm [shape: f32[8,784], index: 8, kind: output, shape index: {0}]   ;;  %s4210_s9 = inlined_call_operand.hbm [shape: f32[8,784], index: 9, kind: output, shape index: {1}]  }
   0x1   :  { %v35_v0 = vld [vmem:[%s4202_s1 + $0x8] sm:$0x3]  ;;  %1998 = vmatprep.subr.mxu0 %v2257_v1  ;;  %v34_v2 = vld [vmem:[%s4202_s1] sm:$0xff]  ;;  %2002 = vmatprep.mubr.msk.f32.mxu0 %vm2258_vm1, %v2257_v1  ;;  %v185_v5 = vld [vmem:[%s4204_s3 + $0x1f8] sm:$0xff] }
   0x2   :  { %v33_v3 = vld [vmem:[%s4201_s0] sm:$0xff]  ;;  %v183_v4 = vld [vmem:[%s4204_s3 + $0x1e8] sm:$0xff]  ;;  %1999 = vmatpush3.msk.msra.mxu0 %vm47_vm0, %v35_v0  ;;  %v184_v8 = vld [vmem:[%s4204_s3 + $0x1f0] sm:$0xff] }
   0x3   :  { %208 = vmatprep.subr.mxu1 %v183_v4  ;;  %v182_v6 = vld [vmem:[%s4204_s3 + $0x1e0] sm:$0xff]  ;;  %v179_v7 = vld [vmem:[%s4204_s3 + $0x1c8] sm:$0xff]  ;;  %2000 = vmatprep.subr.mxu0 %v2257_v1  ;;  %v181_v10 = vld [vmem:[%s4204_s3 + $0x1d8] sm:$0xff] }
   0x4   :  { %209 = vmatpush1.msra.mxu1 %v182_v6  ;;  %v178_v9 = vld [vmem:[%s4204_s3 + $0x1c0] sm:$0xff]  ;;  %2001 = vmatpush3.msra.mxu0 %v34_v2  ;;  %v175_v11 = vld [vmem:[%s4204_s3 + $0x1a8] sm:$0xff]  ;;  %v180_v12 = vld [vmem:[%s4204_s3 + $0x1d0] sm:$0xff] }
   0x5   :  { %210 = vmatprep.subr.mxu1 %v179_v7  ;;  %2003 = vmatmul.mubr.msk.f32.vlgmr.msra.gmra.mxu0 %vm43_vm2, %v33_v3  ;;  %v174_v13 = vld [vmem:[%s4204_s3 + $0x1a0] sm:$0xff]  ;;  %v177_v14 = vld [vmem:[%s4204_s3 + $0x1b8] sm:$0xff]  ;;  %v171_v15 = vld [vmem:[%s4204_s3 + $0x188] sm:$0xff] }
   0x6   :  { %279 = vmatprep.subr.mxu0 %v185_v5  ;;  %211 = vmatpush1.msra.mxu1 %v178_v9  ;;  %v176_v16 = vld [vmem:[%s4204_s3 + $0x1b0] sm:$0xff]  ;;  %v170_v17 = vld [vmem:[%s4204_s3 + $0x180] sm:$0xff]  ;;  %v173_v18 = vld [vmem:[%s4204_s3 + $0x198] sm:$0xff] }
   0x7   :  { %280 = vmatpush1.msra.mxu0 %v184_v8  ;;  %212 = vmatprep.subr.mxu1 %v175_v11  ;;  %v167_v19 = vld [vmem:[%s4204_s3 + $0x168] sm:$0xff]  ;;  %v172_v20 = vld [vmem:[%s4204_s3 + $0x190] sm:$0xff]  ;;  %v166_v21 = vld [vmem:[%s4204_s3 + $0x160] sm:$0xff] }
   0x8   :  { %281 = vmatprep.subr.mxu0 %v181_v10  ;;  %213 = vmatpush1.msra.mxu1 %v174_v13  ;;  %v169_v22 = vld [vmem:[%s4204_s3 + $0x178] sm:$0xff]  ;;  %v163_v23 = vld [vmem:[%s4204_s3 + $0x148] sm:$0xff]  ;;  %v168_v24 = vld [vmem:[%s4204_s3 + $0x170] sm:$0xff] }
   0x9   :  { %282 = vmatpush1.msra.mxu0 %v180_v12  ;;  %214 = vmatprep.subr.mxu1 %v171_v15  ;;  %v162_v25 = vld [vmem:[%s4204_s3 + $0x140] sm:$0xff]  ;;  %v165_v26 = vld [vmem:[%s4204_s3 + $0x158] sm:$0xff]  ;;  %v159_v27 = vld [vmem:[%s4204_s3 + $0x128] sm:$0xff] }
   0xa   :  { %283 = vmatprep.subr.mxu0 %v177_v14  ;;  %215 = vmatpush1.msra.mxu1 %v170_v17  ;;  %v164_v28 = vld [vmem:[%s4204_s3 + $0x150] sm:$0xff]  ;;  %v158_v29 = vld [vmem:[%s4204_s3 + $0x120] sm:$0xff]  ;;  %v161_v30 = vld [vmem:[%s4204_s3 + $0x138] sm:$0xff] }
   0xb   :  { %284 = vmatpush1.msra.mxu0 %v176_v16  ;;  %216 = vmatprep.subr.mxu1 %v167_v19  ;;  %v155_v31 = vld [vmem:[%s4204_s3 + $0x108] sm:$0xff]  ;;  %v160_v32 = vld [vmem:[%s4204_s3 + $0x130] sm:$0xff]  ;;  %v154_v33 = vld [vmem:[%s4204_s3 + $0x100] sm:$0xff] }
   0xc   :  { %285 = vmatprep.subr.mxu0 %v173_v18  ;;  %217 = vmatpush1.msra.mxu1 %v166_v21  ;;  %v157_v34 = vld [vmem:[%s4204_s3 + $0x118] sm:$0xff]  ;;  %v151_v35 = vld [vmem:[%s4204_s3 + $0xe8] sm:$0xff]  ;;  %v156_v36 = vld [vmem:[%s4204_s3 + $0x110] sm:$0xff] }
   0xd   :  { %286 = vmatpush1.msra.mxu0 %v172_v20  ;;  %218 = vmatprep.subr.mxu1 %v163_v23  ;;  %v150_v37 = vld [vmem:[%s4204_s3 + $0xe0] sm:$0xff]  ;;  %v153_v38 = vld [vmem:[%s4204_s3 + $0xf8] sm:$0xff]  ;;  %v147_v39 = vld [vmem:[%s4204_s3 + $0xc8] sm:$0xff] }
   0xe   :  { %287 = vmatprep.subr.mxu0 %v169_v22  ;;  %219 = vmatpush1.msra.mxu1 %v162_v25  ;;  %v152_v40 = vld [vmem:[%s4204_s3 + $0xf0] sm:$0xff]  ;;  %v146_v41 = vld [vmem:[%s4204_s3 + $0xc0] sm:$0xff] }
   0xf   :  { %288 = vmatpush1.msra.mxu0 %v168_v24  ;;  %220 = vmatprep.subr.mxu1 %v159_v27 }
  0x10   :  { %289 = vmatprep.subr.mxu0 %v165_v26  ;;  %221 = vmatpush1.msra.mxu1 %v158_v29 }
  0x11   :  { %290 = vmatpush1.msra.mxu0 %v164_v28  ;;  %222 = vmatprep.subr.mxu1 %v155_v31 }
  0x12   :  { %291 = vmatprep.subr.mxu0 %v161_v30  ;;  %223 = vmatpush1.msra.mxu1 %v154_v33 }
  0x13   :  { %292 = vmatpush1.msra.mxu0 %v160_v32  ;;  %224 = vmatprep.subr.mxu1 %v151_v35 }
  0x14   :  { %293 = vmatprep.subr.mxu0 %v157_v34 }
  0x15   :  { %16 = vsyncpa [#allocation5], 0  ;;  %294 = vmatpush1.msra.mxu0 %v156_v36  ;;  %225 = vmatpush1.msra.mxu1 %v150_v37  ;;  %v149_v42 = vld [vmem:[%s4204_s3 + $0xd8] sm:$0xff]  ;;  %v143_v43 = vld [vmem:[%s4204_s3 + $0xa8] sm:$0xff]  ;;  %vm1418_vm3 = vcmask 130048  }
  0x16   :  { %295 = vmatprep.subr.mxu0 %v153_v38  ;;  %226 = vmatprep.subr.mxu1 %v147_v39  ;;  %v148_v44 = vld [vmem:[%s4204_s3 + $0xd0] sm:$0xff]  ;;  %v142_v45 = vld [vmem:[%s4204_s3 + $0xa0] sm:$0xff]  ;;  %v145_v46 = vld [vmem:[%s4204_s3 + $0xb8] sm:$0xff] }
  0x17   :  { %296 = vmatpush1.msra.mxu0 %v152_v40  ;;  %227 = vmatpush1.msra.mxu1 %v146_v41  ;;  %v139_v47 = vld [vmem:[%s4204_s3 + $0x88] sm:$0xff]  ;;  %v144_v48 = vld [vmem:[%s4204_s3 + $0xb0] sm:$0xff]  ;;  %v138_v49 = vld [vmem:[%s4204_s3 + $0x80] sm:$0xff] }
  0x18   :  { %297 = vmatprep.subr.mxu0 %v149_v42  ;;  %228 = vmatprep.subr.mxu1 %v143_v43  ;;  %v141_v50 = vld [vmem:[%s4204_s3 + $0x98] sm:$0xff]  ;;  %v135_v51 = vld [vmem:[%s4204_s3 + $0x68] sm:$0xff]  ;;  %v140_v52 = vld [vmem:[%s4204_s3 + $0x90] sm:$0xff] }
  0x19   :  { %298 = vmatpush1.msra.mxu0 %v148_v44  ;;  %229 = vmatpush1.msra.mxu1 %v142_v45  ;;  %v134_v53 = vld [vmem:[%s4204_s3 + $0x60] sm:$0xff]  ;;  %v137_v54 = vld [vmem:[%s4204_s3 + $0x78] sm:$0xff]  ;;  %v131_v55 = vld [vmem:[%s4204_s3 + $0x48] sm:$0xff] }
  0x1a   :  { %299 = vmatprep.subr.mxu0 %v145_v46  ;;  %230 = vmatprep.subr.mxu1 %v139_v47  ;;  %v136_v56 = vld [vmem:[%s4204_s3 + $0x70] sm:$0xff]  ;;  %v133_v57 = vld [vmem:[%s4204_s3 + $0x58] sm:$0xff]  ;;  %v130_v58 = vld [vmem:[%s4204_s3 + $0x40] sm:$0xff] }
  0x1b   :  { %300 = vmatpush1.msra.mxu0 %v144_v48  ;;  %231 = vmatpush1.msra.mxu1 %v138_v49  ;;  %v132_v59 = vld [vmem:[%s4204_s3 + $0x50] sm:$0xff]  ;;  %v127_v60 = vld [vmem:[%s4204_s3 + $0x28] sm:$0xff]  ;;  %v129_v61 = vld [vmem:[%s4204_s3 + $0x38] sm:$0xff] }
  0x1c   :  { %301 = vmatprep.subr.mxu0 %v141_v50  ;;  %232 = vmatprep.subr.mxu1 %v135_v51  ;;  %v126_v62 = vld [vmem:[%s4204_s3 + $0x20] sm:$0xff]  ;;  %v128_v63 = vld [vmem:[%s4204_s3 + $0x30] sm:$0xff]  ;;  %v123_v0 = vld [vmem:[%s4204_s3 + $0x8] sm:$0xff] }
  0x1d   :  { %302 = vmatpush1.msra.mxu0 %v140_v52  ;;  %233 = vmatpush1.msra.mxu1 %v134_v53  ;;  %v122_v2 = vld [vmem:[%s4204_s3] sm:$0xff]  ;;  %v124_v3 = vld [vmem:[%s4204_s3 + $0x10] sm:$0xff]  ;;  %v459_v11 = vld [vmem:[%s4206_s5 + $0x348] sm:$0xff] }
  0x1e   :  { %303 = vmatprep.subr.mxu0 %v137_v54  ;;  %234 = vmatprep.subr.mxu1 %v131_v55  ;;  %v460_v4 = vld [vmem:[%s4206_s5 + $0x350] sm:$0xff]  ;;  %v1901_v6 = vld [vmem:[%s4203_s2] ss:$0 sm:$0xff]  ;;  %v683_v12 = vld [vmem:[%s4206_s5 + $0xa48] sm:$0xff] }
  0x1f   :  { %304 = vmatpush1.msra.mxu0 %v136_v56  ;;  %272 = vmatprep.mubr.f32.mxu1 %v2257_v1  ;;  %v684_v5 = vld [vmem:[%s4206_s5 + $0xa50] sm:$0xff]  ;;  %v453_v13 = vld [vmem:[%s4206_s5 + $0x318] sm:$0xff]  ;;  %v446_v17 = vld [vmem:[%s4206_s5 + $0x2e0] sm:$0xff] }
  0x20   :  { %305 = vmatprep.subr.mxu0 %v133_v57  ;;  %343 = vmatprep.mubr.f32.mxu0 %v2257_v1  ;;  %v125_v1 = vld [vmem:[%s4204_s3 + $0x18] sm:$0xff]  ;;  %v452_v15 = vld [vmem:[%s4206_s5 + $0x310] sm:$0xff]  ;;  %v670_v18 = vld [vmem:[%s4206_s5 + $0x9e0] sm:$0xff] }
  0x21   :  { %235 = vmatpush1.msra.mxu1 %v130_v58  ;;  %306 = vmatpush1.msra.mxu0 %v132_v59  ;;  %v677_v14 = vld [vmem:[%s4206_s5 + $0xa18] sm:$0xff]  ;;  %v676_v16 = vld [vmem:[%s4206_s5 + $0xa10] sm:$0xff]  ;;  %v439_v21 = vld [vmem:[%s4206_s5 + $0x2a8] sm:$0xff] }
  0x22   :  { %236 = vmatprep.subr.mxu1 %v127_v60  ;;  %307 = vmatprep.subr.mxu0 %v129_v61  ;;  %v445_v19 = vld [vmem:[%s4206_s5 + $0x2d8] sm:$0xff]  ;;  %v663_v22 = vld [vmem:[%s4206_s5 + $0x9a8] sm:$0xff]  ;;  %v438_v23 = vld [vmem:[%s4206_s5 + $0x2a0] sm:$0xff] }
  0x23   :  { %237 = vmatpush1.msra.mxu1 %v126_v62  ;;  %308 = vmatpush1.msra.mxu0 %v128_v63  ;;  %v669_v20 = vld [vmem:[%s4206_s5 + $0x9d8] sm:$0xff]  ;;  %v662_v24 = vld [vmem:[%s4206_s5 + $0x9a0] sm:$0xff]  ;;  %v432_v25 = vld [vmem:[%s4206_s5 + $0x270] sm:$0xff] }
  0x24   :  { %238 = vmatprep.subr.mxu1 %v123_v0  ;;  %309 = vmatprep.subr.mxu0 %v125_v1  ;;  %v656_v26 = vld [vmem:[%s4206_s5 + $0x970] sm:$0xff]  ;;  %v431_v27 = vld [vmem:[%s4206_s5 + $0x268] sm:$0xff]  ;;  %v425_v29 = vld [vmem:[%s4206_s5 + $0x238] sm:$0xff] }
  0x25   :  { %239 = vmatpush1.msra.mxu1 %v122_v2  ;;  %310 = vmatpush1.msra.mxu0 %v124_v3  ;;  %v655_v28 = vld [vmem:[%s4206_s5 + $0x968] sm:$0xff]  ;;  %v649_v30 = vld [vmem:[%s4206_s5 + $0x938] sm:$0xff]  ;;  %v424_v31 = vld [vmem:[%s4206_s5 + $0x230] sm:$0xff] }
  0x26   :  { %839 = vmatprep.subr.mxu1 %v460_v4  ;;  %910 = vmatprep.subr.mxu0 %v684_v5  ;;  %v648_v32 = vld [vmem:[%s4206_s5 + $0x930] sm:$0xff]  ;;  %v418_v33 = vld [vmem:[%s4206_s5 + $0x200] sm:$0xff]  ;;  %v417_v35 = vld [vmem:[%s4206_s5 + $0x1f8] sm:$0xff] }
  0x27   :  { %v642_v34 = vld [vmem:[%s4206_s5 + $0x900] sm:$0xff]  ;;  %v641_v36 = vld [vmem:[%s4206_s5 + $0x8f8] sm:$0xff]  ;;  %v411_v37 = vld [vmem:[%s4206_s5 + $0x1c8] sm:$0xff] }
  0x28   :  { %v635_v38 = vld [vmem:[%s4206_s5 + $0x8c8] sm:$0xff]  ;;  %v410_v39 = vld [vmem:[%s4206_s5 + $0x1c0] sm:$0xff]  ;;  %v404_v41 = vld [vmem:[%s4206_s5 + $0x190] sm:$0xff] }
  0x29   :  { %v634_v40 = vld [vmem:[%s4206_s5 + $0x8c0] sm:$0xff]  ;;  %v628_v42 = vld [vmem:[%s4206_s5 + $0x890] sm:$0xff]  ;;  %v403_v43 = vld [vmem:[%s4206_s5 + $0x188] sm:$0xff] }
  0x2a   :  { %v627_v44 = vld [vmem:[%s4206_s5 + $0x888] sm:$0xff]  ;;  %v397_v45 = vld [vmem:[%s4206_s5 + $0x158] sm:$0xff]  ;;  %v396_v47 = vld [vmem:[%s4206_s5 + $0x150] sm:$0xff] }
  0x2b   :  { %v621_v46 = vld [vmem:[%s4206_s5 + $0x858] sm:$0xff]  ;;  %v620_v48 = vld [vmem:[%s4206_s5 + $0x850] sm:$0xff]  ;;  %v390_v49 = vld [vmem:[%s4206_s5 + $0x120] sm:$0xff] }
  0x2c   :  { %v614_v50 = vld [vmem:[%s4206_s5 + $0x820] sm:$0xff]  ;;  %v389_v51 = vld [vmem:[%s4206_s5 + $0x118] sm:$0xff]  ;;  %v383_v53 = vld [vmem:[%s4206_s5 + $0xe8] sm:$0xff] }
  0x2d   :  { %v613_v52 = vld [vmem:[%s4206_s5 + $0x818] sm:$0xff]  ;;  %v607_v54 = vld [vmem:[%s4206_s5 + $0x7e8] sm:$0xff]  ;;  %v382_v55 = vld [vmem:[%s4206_s5 + $0xe0] sm:$0xff] }
  0x2e   :  { %v606_v56 = vld [vmem:[%s4206_s5 + $0x7e0] sm:$0xff]  ;;  %v376_v57 = vld [vmem:[%s4206_s5 + $0xb0] sm:$0xff]  ;;  %v375_v59 = vld [vmem:[%s4206_s5 + $0xa8] sm:$0xff] }
  0x2f   :  { %v600_v58 = vld [vmem:[%s4206_s5 + $0x7b0] sm:$0xff]  ;;  %v599_v60 = vld [vmem:[%s4206_s5 + $0x7a8] sm:$0xff]  ;;  %v369_v61 = vld [vmem:[%s4206_s5 + $0x78] sm:$0xff] }
  0x30   :  { %v593_v62 = vld [vmem:[%s4206_s5 + $0x778] sm:$0xff]  ;;  %v368_v63 = vld [vmem:[%s4206_s5 + $0x70] sm:$0xff]  ;;  %v362_v1 = vld [vmem:[%s4206_s5 + $0x40] sm:$0xff] }
  0x31   :  { %v592_v0 = vld [vmem:[%s4206_s5 + $0x770] sm:$0xff]  ;;  %v586_v2 = vld [vmem:[%s4206_s5 + $0x740] sm:$0xff]  ;;  %v361_v3 = vld [vmem:[%s4206_s5 + $0x38] sm:$0xff] }
  0x32   :  { %v585_v4 = vld [vmem:[%s4206_s5 + $0x738] sm:$0xff]  ;;  %v355_v5 = vld [vmem:[%s4206_s5 + $0x8] sm:$0xff] }
  0xc5   :  { %v117_v7 = vpop.f32.mrf.mxu0 }
  0xc6   :  { %v118_v8 = vadd.f32 %v1901_v6, %v117_v7  ;;  %v579_v6 = vld [vmem:[%s4206_s5 + $0x708] sm:$0xff]  ;;  %v354_v7 = vld [vmem:[%s4206_s5] sm:$0xff] }
  0xc7   :  { %v2004_v9 = vpop.f32.mrf.mxu0 }
  0xc8   :  { %v121_v10 = vmax.f32 %v118_v8, 0.0  ;;  %v578_v8 = vld [vmem:[%s4206_s5 + $0x700] sm:$0xff]  ;;  %v572_v9 = vld [vmem:[%s4206_s5 + $0x6d0] sm:$0xff] }
  0xca   :  { %273 = vmatmul.mubr.f32.vlgmr.msra.gmra.mxu1 %v121_v10  ;;  %344 = vmatmul.mubr.f32.vlgmr.msra.gmra.mxu0 %v121_v10  ;;  %v796_v10 = vld [vmem:[%s4206_s5 + $0xdd0] sm:$0xff] }
  0xcb   :  { %840 = vmatpush1.msra.mxu1 %v459_v11  ;;  %911 = vmatpush1.msra.mxu0 %v683_v12  ;;  %v571_v11 = vld [vmem:[%s4206_s5 + $0x6c8] sm:$0xff] }
  0xcc   :  { %841 = vmatprep.subr.mxu1 %v453_v13  ;;  %912 = vmatprep.subr.mxu0 %v677_v14  ;;  %v795_v12 = vld [vmem:[%s4206_s5 + $0xdc8] sm:$0xff]  ;;  %v565_v13 = vld [vmem:[%s4206_s5 + $0x698] sm:$0xff] }
  0xcd   :  { %842 = vmatpush1.msra.mxu1 %v452_v15  ;;  %913 = vmatpush1.msra.mxu0 %v676_v16  ;;  %v789_v14 = vld [vmem:[%s4206_s5 + $0xd98] sm:$0xff]  ;;  %v564_v15 = vld [vmem:[%s4206_s5 + $0x690] sm:$0xff] }
  0xce   :  { %843 = vmatprep.subr.mxu1 %v446_v17  ;;  %914 = vmatprep.subr.mxu0 %v670_v18  ;;  %v788_v16 = vld [vmem:[%s4206_s5 + $0xd90] sm:$0xff]  ;;  %v558_v17 = vld [vmem:[%s4206_s5 + $0x660] sm:$0xff] }
  0xcf   :  { %844 = vmatpush1.msra.mxu1 %v445_v19  ;;  %915 = vmatpush1.msra.mxu0 %v669_v20  ;;  %v782_v18 = vld [vmem:[%s4206_s5 + $0xd60] sm:$0xff]  ;;  %v557_v19 = vld [vmem:[%s4206_s5 + $0x658] sm:$0xff] }
  0xd0   :  { %845 = vmatprep.subr.mxu1 %v439_v21  ;;  %916 = vmatprep.subr.mxu0 %v663_v22  ;;  %v781_v20 = vld [vmem:[%s4206_s5 + $0xd58] sm:$0xff]  ;;  %v551_v21 = vld [vmem:[%s4206_s5 + $0x628] sm:$0xff] }
  0xd1   :  { %846 = vmatpush1.msra.mxu1 %v438_v23  ;;  %917 = vmatpush1.msra.mxu0 %v662_v24  ;;  %v775_v22 = vld [vmem:[%s4206_s5 + $0xd28] sm:$0xff]  ;;  %v550_v23 = vld [vmem:[%s4206_s5 + $0x620] sm:$0xff] }
  0xd2   :  { %847 = vmatprep.subr.mxu1 %v432_v25  ;;  %918 = vmatprep.subr.mxu0 %v656_v26  ;;  %v774_v24 = vld [vmem:[%s4206_s5 + $0xd20] sm:$0xff]  ;;  %v544_v25 = vld [vmem:[%s4206_s5 + $0x5f0] sm:$0xff] }
  0xd3   :  { %848 = vmatpush1.msra.mxu1 %v431_v27  ;;  %919 = vmatpush1.msra.mxu0 %v655_v28  ;;  %v768_v26 = vld [vmem:[%s4206_s5 + $0xcf0] sm:$0xff]  ;;  %v543_v27 = vld [vmem:[%s4206_s5 + $0x5e8] sm:$0xff] }
  0xd4   :  { %849 = vmatprep.subr.mxu1 %v425_v29  ;;  %920 = vmatprep.subr.mxu0 %v649_v30  ;;  %v767_v28 = vld [vmem:[%s4206_s5 + $0xce8] sm:$0xff]  ;;  %v537_v29 = vld [vmem:[%s4206_s5 + $0x5b8] sm:$0xff] }
  0xd5   :  { %850 = vmatpush1.msra.mxu1 %v424_v31  ;;  %921 = vmatpush1.msra.mxu0 %v648_v32  ;;  %v761_v30 = vld [vmem:[%s4206_s5 + $0xcb8] sm:$0xff]  ;;  %v536_v31 = vld [vmem:[%s4206_s5 + $0x5b0] sm:$0xff] }
  0xd6   :  { %851 = vmatprep.subr.mxu1 %v418_v33  ;;  %922 = vmatprep.subr.mxu0 %v642_v34  ;;  %v760_v32 = vld [vmem:[%s4206_s5 + $0xcb0] sm:$0xff]  ;;  %v530_v33 = vld [vmem:[%s4206_s5 + $0x580] sm:$0xff] }
  0xd7   :  { %852 = vmatpush1.msra.mxu1 %v417_v35  ;;  %923 = vmatpush1.msra.mxu0 %v641_v36  ;;  %v754_v34 = vld [vmem:[%s4206_s5 + $0xc80] sm:$0xff]  ;;  %v529_v35 = vld [vmem:[%s4206_s5 + $0x578] sm:$0xff] }
  0xd8   :  { %853 = vmatprep.subr.mxu1 %v411_v37  ;;  %924 = vmatprep.subr.mxu0 %v635_v38  ;;  %v753_v36 = vld [vmem:[%s4206_s5 + $0xc78] sm:$0xff]  ;;  %v523_v37 = vld [vmem:[%s4206_s5 + $0x548] sm:$0xff] }
  0xd9   :  { %854 = vmatpush1.msra.mxu1 %v410_v39  ;;  %925 = vmatpush1.msra.mxu0 %v634_v40  ;;  %v747_v38 = vld [vmem:[%s4206_s5 + $0xc48] sm:$0xff]  ;;  %v522_v39 = vld [vmem:[%s4206_s5 + $0x540] sm:$0xff] }
  0xda   :  { %855 = vmatprep.subr.mxu1 %v404_v41  ;;  %926 = vmatprep.subr.mxu0 %v628_v42  ;;  %v746_v40 = vld [vmem:[%s4206_s5 + $0xc40] sm:$0xff]  ;;  %v516_v41 = vld [vmem:[%s4206_s5 + $0x510] sm:$0xff] }
  0xdb   :  { %856 = vmatpush1.msra.mxu1 %v403_v43  ;;  %927 = vmatpush1.msra.mxu0 %v627_v44  ;;  %v740_v42 = vld [vmem:[%s4206_s5 + $0xc10] sm:$0xff]  ;;  %v515_v43 = vld [vmem:[%s4206_s5 + $0x508] sm:$0xff] }
  0xdc   :  { %857 = vmatprep.subr.mxu1 %v397_v45  ;;  %928 = vmatprep.subr.mxu0 %v621_v46  ;;  %v739_v44 = vld [vmem:[%s4206_s5 + $0xc08] sm:$0xff]  ;;  %v509_v45 = vld [vmem:[%s4206_s5 + $0x4d8] sm:$0xff] }
  0xdd   :  { %858 = vmatpush1.msra.mxu1 %v396_v47  ;;  %929 = vmatpush1.msra.mxu0 %v620_v48  ;;  %v733_v46 = vld [vmem:[%s4206_s5 + $0xbd8] sm:$0xff]  ;;  %v508_v47 = vld [vmem:[%s4206_s5 + $0x4d0] sm:$0xff] }
  0xde   :  { %859 = vmatprep.subr.mxu1 %v390_v49  ;;  %930 = vmatprep.subr.mxu0 %v614_v50  ;;  %v732_v48 = vld [vmem:[%s4206_s5 + $0xbd0] sm:$0xff]  ;;  %v502_v49 = vld [vmem:[%s4206_s5 + $0x4a0] sm:$0xff] }
  0xdf   :  { %860 = vmatpush1.msra.mxu1 %v389_v51  ;;  %931 = vmatpush1.msra.mxu0 %v613_v52  ;;  %v726_v50 = vld [vmem:[%s4206_s5 + $0xba0] sm:$0xff]  ;;  %v501_v51 = vld [vmem:[%s4206_s5 + $0x498] sm:$0xff] }
  0xe0   :  { %861 = vmatprep.subr.mxu1 %v383_v53  ;;  %932 = vmatprep.subr.mxu0 %v607_v54  ;;  %v725_v52 = vld [vmem:[%s4206_s5 + $0xb98] sm:$0xff]  ;;  %v495_v53 = vld [vmem:[%s4206_s5 + $0x468] sm:$0xff] }
  0xe1   :  { %862 = vmatpush1.msra.mxu1 %v382_v55  ;;  %933 = vmatpush1.msra.mxu0 %v606_v56  ;;  %v719_v54 = vld [vmem:[%s4206_s5 + $0xb68] sm:$0xff]  ;;  %v494_v55 = vld [vmem:[%s4206_s5 + $0x460] sm:$0xff] }
  0xe2   :  { %863 = vmatprep.subr.mxu1 %v376_v57  ;;  %934 = vmatprep.subr.mxu0 %v600_v58  ;;  %v718_v56 = vld [vmem:[%s4206_s5 + $0xb60] sm:$0xff]  ;;  %v488_v57 = vld [vmem:[%s4206_s5 + $0x430] sm:$0xff] }
  0xe3   :  { %864 = vmatpush1.msra.mxu1 %v375_v59  ;;  %935 = vmatpush1.msra.mxu0 %v599_v60  ;;  %v712_v58 = vld [vmem:[%s4206_s5 + $0xb30] sm:$0xff]  ;;  %v487_v59 = vld [vmem:[%s4206_s5 + $0x428] sm:$0xff] }
  0xe4   :  { %865 = vmatprep.subr.mxu1 %v369_v61  ;;  %936 = vmatprep.subr.mxu0 %v593_v62  ;;  %v711_v60 = vld [vmem:[%s4206_s5 + $0xb28] sm:$0xff]  ;;  %v481_v61 = vld [vmem:[%s4206_s5 + $0x3f8] sm:$0xff] }
  0xe5   :  { %866 = vmatpush1.msra.mxu1 %v368_v63  ;;  %937 = vmatpush1.msra.mxu0 %v592_v0  ;;  %v705_v62 = vld [vmem:[%s4206_s5 + $0xaf8] sm:$0xff]  ;;  %v480_v63 = vld [vmem:[%s4206_s5 + $0x3f0] sm:$0xff] }
  0xe6   :  { %867 = vmatprep.subr.mxu1 %v362_v1  ;;  %938 = vmatprep.subr.mxu0 %v586_v2  ;;  %v704_v0 = vld [vmem:[%s4206_s5 + $0xaf0] sm:$0xff]  ;;  %v474_v1 = vld [vmem:[%s4206_s5 + $0x3c0] sm:$0xff] }
  0xe7   :  { %868 = vmatpush1.msra.mxu1 %v361_v3  ;;  %939 = vmatpush1.msra.mxu0 %v585_v4  ;;  %v698_v2 = vld [vmem:[%s4206_s5 + $0xac0] sm:$0xff]  ;;  %v473_v3 = vld [vmem:[%s4206_s5 + $0x3b8] sm:$0xff] }
  0xe8   :  { %869 = vmatprep.subr.mxu1 %v355_v5  ;;  %940 = vmatprep.subr.mxu0 %v579_v6  ;;  %v697_v4 = vld [vmem:[%s4206_s5 + $0xab8] sm:$0xff]  ;;  %v467_v5 = vld [vmem:[%s4206_s5 + $0x388] sm:$0xff] }
  0xe9   :  { %870 = vmatpush1.msra.mxu1 %v354_v7  ;;  %941 = vmatpush1.msra.mxu0 %v578_v8  ;;  %v691_v6 = vld [vmem:[%s4206_s5 + $0xa88] sm:$0xff]  ;;  %v466_v7 = vld [vmem:[%s4206_s5 + $0x380] sm:$0xff] }
  0xea   :  { %871 = vmatprep.subr.mxu1 %v572_v9  ;;  %942 = vmatprep.subr.mxu0 %v796_v10  ;;  %v690_v8 = vld [vmem:[%s4206_s5 + $0xa80] sm:$0xff] }
  0xeb   :  { %872 = vmatpush2.msra.mxu1 %v571_v11  ;;  %943 = vmatpush2.msra.mxu0 %v795_v12  ;;  %v462_v9 = vld [vmem:[%s4206_s5 + $0x360] sm:$0xff]  ;;  %v188_v11 = vlaneseq }
  0xec   :  { %873 = vmatprep.subr.mxu1 %v565_v13  ;;  %944 = vmatprep.subr.mxu0 %v789_v14  ;;  %v686_v10 = vld [vmem:[%s4206_s5 + $0xa60] sm:$0xff] }
  0xed   :  { %874 = vmatpush2.msra.mxu1 %v564_v15  ;;  %945 = vmatpush2.msra.mxu0 %v788_v16  ;;  %v2910_v12 = vshrl.u32 %v188_v11, 7  ;;  %v186_v15 = vld [vmem:[%s4205_s4] sm:$0xf]  ;;  %v615_v11 = vld [vmem:[%s4206_s5 + $0x828] sm:$0xff] }
  0xee   :  { %875 = vmatprep.subr.mxu1 %v558_v17  ;;  %946 = vmatprep.subr.mxu0 %v782_v18 }
  0xef   :  { %876 = vmatpush2.msra.mxu1 %v557_v19  ;;  %947 = vmatpush2.msra.mxu0 %v781_v20  ;;  %v190_v13 = vsub.s32 0, %v2910_v12  ;;  %v198_v14 = vsub.s32 2, %v2910_v12  ;;  %v194_v16 = vsub.s32 1, %v2910_v12  ;;  %v202_v17 = vsub.s32 3, %v2910_v12 }
  0xf0   :  { %877 = vmatprep.subr.mxu1 %v551_v21  ;;  %948 = vmatprep.subr.mxu0 %v775_v22 }
  0xf1   :  { %878 = vmatpush2.msra.mxu1 %v550_v23  ;;  %949 = vmatpush2.msra.mxu0 %v774_v24  ;;  %v191_v18 = vrot.slane %v186_v15, %v190_v13  ;;  %v199_v19 = vrot.slane %v186_v15, %v198_v14  ;;  %v195_v20 = vrot.slane %v186_v15, %v194_v16 }
  0xf2   :  { %879 = vmatprep.subr.mxu1 %v544_v25  ;;  %950 = vmatprep.subr.mxu0 %v768_v26  ;;  %v203_v21 = vrot.slane %v186_v15, %v202_v17  ;;  %v385_v15 = vld [vmem:[%s4206_s5 + $0xf8] sm:$0xff] }
  0xf3   :  { %880 = vmatpush2.msra.mxu1 %v543_v27  ;;  %951 = vmatpush2.msra.mxu0 %v767_v28 }
  0xf4   :  { %881 = vmatprep.subr.mxu1 %v537_v29  ;;  %952 = vmatprep.subr.mxu0 %v761_v30 }
  0xf5   :  { %882 = vmatpush2.msra.mxu1 %v536_v31  ;;  %953 = vmatpush2.msra.mxu0 %v760_v32 }
  0xf6   :  { %883 = vmatprep.subr.mxu1 %v530_v33  ;;  %954 = vmatprep.subr.mxu0 %v754_v34  ;;  %v461_v34 = vld [vmem:[%s4206_s5 + $0x358] sm:$0xff] }
  0xf7   :  { %884 = vmatpush2.msra.mxu1 %v529_v35  ;;  %955 = vmatpush2.msra.mxu0 %v753_v36  ;;  %v685_v35 = vld [vmem:[%s4206_s5 + $0xa58] sm:$0xff]  ;;  %v455_v36 = vld [vmem:[%s4206_s5 + $0x328] sm:$0xff] }
  0xf8   :  { %885 = vmatprep.subr.mxu1 %v523_v37  ;;  %956 = vmatprep.subr.mxu0 %v747_v38  ;;  %v679_v37 = vld [vmem:[%s4206_s5 + $0xa28] sm:$0xff]  ;;  %v454_v38 = vld [vmem:[%s4206_s5 + $0x320] sm:$0xff] }
  0xf9   :  { %886 = vmatpush2.msra.mxu1 %v522_v39  ;;  %957 = vmatpush2.msra.mxu0 %v746_v40  ;;  %v678_v39 = vld [vmem:[%s4206_s5 + $0xa20] sm:$0xff]  ;;  %v448_v40 = vld [vmem:[%s4206_s5 + $0x2f0] sm:$0xff] }
  0xfa   :  { %887 = vmatprep.subr.mxu1 %v516_v41  ;;  %958 = vmatprep.subr.mxu0 %v740_v42  ;;  %v672_v41 = vld [vmem:[%s4206_s5 + $0x9f0] sm:$0xff]  ;;  %v447_v42 = vld [vmem:[%s4206_s5 + $0x2e8] sm:$0xff] }
  0xfb   :  { %888 = vmatpush2.msra.mxu1 %v515_v43  ;;  %959 = vmatpush2.msra.mxu0 %v739_v44  ;;  %v671_v43 = vld [vmem:[%s4206_s5 + $0x9e8] sm:$0xff]  ;;  %v441_v44 = vld [vmem:[%s4206_s5 + $0x2b8] sm:$0xff] }
  0xfc   :  { %889 = vmatprep.subr.mxu1 %v509_v45  ;;  %960 = vmatprep.subr.mxu0 %v733_v46  ;;  %v665_v45 = vld [vmem:[%s4206_s5 + $0x9b8] sm:$0xff]  ;;  %v440_v46 = vld [vmem:[%s4206_s5 + $0x2b0] sm:$0xff] }
  0xfd   :  { %890 = vmatpush2.msra.mxu1 %v508_v47  ;;  %961 = vmatpush2.msra.mxu0 %v732_v48  ;;  %v664_v47 = vld [vmem:[%s4206_s5 + $0x9b0] sm:$0xff]  ;;  %v434_v48 = vld [vmem:[%s4206_s5 + $0x280] sm:$0xff] }
  0xfe   :  { %891 = vmatprep.subr.mxu1 %v502_v49  ;;  %962 = vmatprep.subr.mxu0 %v726_v50  ;;  %v658_v49 = vld [vmem:[%s4206_s5 + $0x980] sm:$0xff]  ;;  %v433_v50 = vld [vmem:[%s4206_s5 + $0x278] sm:$0xff] }
  0xff   :  { %892 = vmatpush2.msra.mxu1 %v501_v51  ;;  %963 = vmatpush2.msra.mxu0 %v725_v52  ;;  %v657_v51 = vld [vmem:[%s4206_s5 + $0x978] sm:$0xff]  ;;  %v427_v52 = vld [vmem:[%s4206_s5 + $0x248] sm:$0xff] }
 0x100   :  { %893 = vmatprep.subr.mxu1 %v495_v53  ;;  %964 = vmatprep.subr.mxu0 %v719_v54  ;;  %v651_v53 = vld [vmem:[%s4206_s5 + $0x948] sm:$0xff]  ;;  %v426_v54 = vld [vmem:[%s4206_s5 + $0x240] sm:$0xff] }
 0x101   :  { %894 = vmatpush2.msra.mxu1 %v494_v55  ;;  %965 = vmatpush2.msra.mxu0 %v718_v56  ;;  %v650_v55 = vld [vmem:[%s4206_s5 + $0x940] sm:$0xff]  ;;  %v420_v56 = vld [vmem:[%s4206_s5 + $0x210] sm:$0xff] }
 0x102   :  { %895 = vmatprep.subr.mxu1 %v488_v57  ;;  %966 = vmatprep.subr.mxu0 %v712_v58  ;;  %v644_v57 = vld [vmem:[%s4206_s5 + $0x910] sm:$0xff]  ;;  %v419_v58 = vld [vmem:[%s4206_s5 + $0x208] sm:$0xff] }
 0x103   :  { %896 = vmatpush2.msra.mxu1 %v487_v59  ;;  %967 = vmatpush2.msra.mxu0 %v711_v60  ;;  %v643_v59 = vld [vmem:[%s4206_s5 + $0x908] sm:$0xff]  ;;  %v413_v60 = vld [vmem:[%s4206_s5 + $0x1d8] sm:$0xff] }
 0x104   :  { %897 = vmatprep.subr.mxu1 %v481_v61  ;;  %968 = vmatprep.subr.mxu0 %v705_v62  ;;  %v637_v61 = vld [vmem:[%s4206_s5 + $0x8d8] sm:$0xff]  ;;  %v412_v62 = vld [vmem:[%s4206_s5 + $0x1d0] sm:$0xff] }
 0x105   :  { %898 = vmatpush2.msra.mxu1 %v480_v63  ;;  %969 = vmatpush2.msra.mxu0 %v704_v0  ;;  %v636_v63 = vld [vmem:[%s4206_s5 + $0x8d0] sm:$0xff]  ;;  %v406_v0 = vld [vmem:[%s4206_s5 + $0x1a0] sm:$0xff] }
 0x106   :  { %899 = vmatprep.subr.mxu1 %v474_v1  ;;  %970 = vmatprep.subr.mxu0 %v698_v2  ;;  %v630_v1 = vld [vmem:[%s4206_s5 + $0x8a0] sm:$0xff]  ;;  %v405_v2 = vld [vmem:[%s4206_s5 + $0x198] sm:$0xff] }
 0x107   :  { %900 = vmatpush2.msra.mxu1 %v473_v3  ;;  %971 = vmatpush2.msra.mxu0 %v697_v4  ;;  %v629_v3 = vld [vmem:[%s4206_s5 + $0x898] sm:$0xff]  ;;  %v399_v4 = vld [vmem:[%s4206_s5 + $0x168] sm:$0xff] }
 0x108   :  { %901 = vmatprep.subr.mxu1 %v467_v5  ;;  %972 = vmatprep.subr.mxu0 %v691_v6  ;;  %v623_v5 = vld [vmem:[%s4206_s5 + $0x868] sm:$0xff]  ;;  %v398_v6 = vld [vmem:[%s4206_s5 + $0x160] sm:$0xff] }
 0x109   :  { %902 = vmatpush2.msra.mxu1 %v466_v7  ;;  %973 = vmatpush2.msra.mxu0 %v690_v8  ;;  %v622_v7 = vld [vmem:[%s4206_s5 + $0x860] sm:$0xff]  ;;  %v392_v8 = vld [vmem:[%s4206_s5 + $0x130] sm:$0xff] }
 0x10a   :  { %981 = vmatprep.subr.mxu1 %v462_v9  ;;  %1052 = vmatprep.subr.mxu0 %v686_v10  ;;  %v616_v9 = vld [vmem:[%s4206_s5 + $0x830] sm:$0xff]  ;;  %v391_v10 = vld [vmem:[%s4206_s5 + $0x128] sm:$0xff] }
 0x18a   :  { %v274_v22 = vpop.f32.mrf.mxu1  ;;  %v345_v23 = vpop.f32.mrf.mxu0 }
 0x18b   :  { %v275_v24 = vadd.f32 %v274_v22, %v191_v18  ;;  %v346_v25 = vadd.f32 %v345_v23, %v199_v19  ;;  %v609_v18 = vld [vmem:[%s4206_s5 + $0x7f8] sm:$0xff]  ;;  %v384_v19 = vld [vmem:[%s4206_s5 + $0xf0] sm:$0xff]  ;;  %v602_v22 = vld [vmem:[%s4206_s5 + $0x7c0] sm:$0xff] }
 0x18c   :  { %v276_v26 = vpop.f32.mrf.mxu1  ;;  %v347_v27 = vpop.f32.mrf.mxu0  ;;  %v377_v23 = vld [vmem:[%s4206_s5 + $0xb8] sm:$0xff] }
 0x18d   :  { %v277_v28 = vadd.f32 %v276_v26, %v195_v20  ;;  %v348_v29 = vadd.f32 %v347_v27, %v203_v21  ;;  %v2931_v32 = vmax.f32 %v275_v24, 0.0  ;;  %v2933_v33 = vmax.f32 %v346_v25, 0.0  ;;  %v608_v20 = vld [vmem:[%s4206_s5 + $0x7f0] sm:$0xff]  ;;  %v378_v21 = vld [vmem:[%s4206_s5 + $0xc0] sm:$0xff]  ;;  %v601_v24 = vld [vmem:[%s4206_s5 + $0x7b8] sm:$0xff] }
 0x18e   :  { %v371_v25 = vld [vmem:[%s4206_s5 + $0x88] sm:$0xff]  ;;  %v370_v27 = vld [vmem:[%s4206_s5 + $0x80] sm:$0xff] }
 0x18f   :  { %v2927_v30 = vmax.f32 %v277_v28, 0.0  ;;  %v2929_v31 = vmax.f32 %v348_v29, 0.0  ;;  %v595_v26 = vld [vmem:[%s4206_s5 + $0x788] sm:$0xff]  ;;  %v594_v28 = vld [vmem:[%s4206_s5 + $0x780] sm:$0xff]  ;;  %v364_v29 = vld [vmem:[%s4206_s5 + $0x50] sm:$0xff] }
 0x191   :  { %903 = vmatprep.mubr.f32.mxu1 %v2927_v30  ;;  %974 = vmatprep.mubr.f32.mxu0 %v2929_v31 }
 0x192   :  { %904 = vmatmul.mubr.f32.vlgmr.msra.gmra.mxu1 %v2931_v32  ;;  %975 = vmatmul.mubr.f32.vlgmr.msra.gmra.mxu0 %v2933_v33 }
 0x193   :  { %982 = vmatpush1.msra.mxu1 %v461_v34  ;;  %1053 = vmatpush1.msra.mxu0 %v685_v35  ;;  %v588_v34 = vld [vmem:[%s4206_s5 + $0x750] sm:$0xff]  ;;  %v363_v35 = vld [vmem:[%s4206_s5 + $0x48] sm:$0xff] }
 0x194   :  { %983 = vmatprep.subr.mxu1 %v455_v36  ;;  %1045 = vmatprep.mubr.f32.mxu1 %v2927_v30  ;;  %v587_v36 = vld [vmem:[%s4206_s5 + $0x748] sm:$0xff] }
 0x195   :  { %1054 = vmatprep.subr.mxu0 %v679_v37  ;;  %1116 = vmatprep.mubr.f32.mxu0 %v2929_v31  ;;  %v357_v37 = vld [vmem:[%s4206_s5 + $0x18] sm:$0xff] }
 0x196   :  { %984 = vmatpush1.msra.mxu1 %v454_v38  ;;  %1055 = vmatpush1.msra.mxu0 %v678_v39  ;;  %v581_v38 = vld [vmem:[%s4206_s5 + $0x718] sm:$0xff]  ;;  %v356_v39 = vld [vmem:[%s4206_s5 + $0x10] sm:$0xff] }
 0x197   :  { %985 = vmatprep.subr.mxu1 %v448_v40  ;;  %1056 = vmatprep.subr.mxu0 %v672_v41  ;;  %v580_v40 = vld [vmem:[%s4206_s5 + $0x710] sm:$0xff]  ;;  %v574_v41 = vld [vmem:[%s4206_s5 + $0x6e0] sm:$0xff] }
 0x198   :  { %986 = vmatpush1.msra.mxu1 %v447_v42  ;;  %1057 = vmatpush1.msra.mxu0 %v671_v43  ;;  %v798_v42 = vld [vmem:[%s4206_s5 + $0xde0] sm:$0xff]  ;;  %v573_v43 = vld [vmem:[%s4206_s5 + $0x6d8] sm:$0xff] }
 0x199   :  { %987 = vmatprep.subr.mxu1 %v441_v44  ;;  %1058 = vmatprep.subr.mxu0 %v665_v45  ;;  %v797_v44 = vld [vmem:[%s4206_s5 + $0xdd8] sm:$0xff]  ;;  %v567_v45 = vld [vmem:[%s4206_s5 + $0x6a8] sm:$0xff] }
 0x19a   :  { %988 = vmatpush1.msra.mxu1 %v440_v46  ;;  %1059 = vmatpush1.msra.mxu0 %v664_v47  ;;  %v791_v46 = vld [vmem:[%s4206_s5 + $0xda8] sm:$0xff]  ;;  %v566_v47 = vld [vmem:[%s4206_s5 + $0x6a0] sm:$0xff] }
 0x19b   :  { %989 = vmatprep.subr.mxu1 %v434_v48  ;;  %1060 = vmatprep.subr.mxu0 %v658_v49  ;;  %v790_v48 = vld [vmem:[%s4206_s5 + $0xda0] sm:$0xff]  ;;  %v560_v49 = vld [vmem:[%s4206_s5 + $0x670] sm:$0xff] }
 0x19c   :  { %990 = vmatpush1.msra.mxu1 %v433_v50  ;;  %1061 = vmatpush1.msra.mxu0 %v657_v51  ;;  %v784_v50 = vld [vmem:[%s4206_s5 + $0xd70] sm:$0xff]  ;;  %v559_v51 = vld [vmem:[%s4206_s5 + $0x668] sm:$0xff] }
 0x19d   :  { %991 = vmatprep.subr.mxu1 %v427_v52  ;;  %1062 = vmatprep.subr.mxu0 %v651_v53  ;;  %v783_v52 = vld [vmem:[%s4206_s5 + $0xd68] sm:$0xff]  ;;  %v553_v53 = vld [vmem:[%s4206_s5 + $0x638] sm:$0xff] }
 0x19e   :  { %992 = vmatpush1.msra.mxu1 %v426_v54  ;;  %1063 = vmatpush1.msra.mxu0 %v650_v55  ;;  %v777_v54 = vld [vmem:[%s4206_s5 + $0xd38] sm:$0xff]  ;;  %v552_v55 = vld [vmem:[%s4206_s5 + $0x630] sm:$0xff] }
 0x19f   :  { %993 = vmatprep.subr.mxu1 %v420_v56  ;;  %1064 = vmatprep.subr.mxu0 %v644_v57  ;;  %v776_v56 = vld [vmem:[%s4206_s5 + $0xd30] sm:$0xff]  ;;  %v546_v57 = vld [vmem:[%s4206_s5 + $0x600] sm:$0xff] }
 0x1a0   :  { %994 = vmatpush1.msra.mxu1 %v419_v58  ;;  %1065 = vmatpush1.msra.mxu0 %v643_v59  ;;  %v770_v58 = vld [vmem:[%s4206_s5 + $0xd00] sm:$0xff]  ;;  %v545_v59 = vld [vmem:[%s4206_s5 + $0x5f8] sm:$0xff] }
 0x1a1   :  { %995 = vmatprep.subr.mxu1 %v413_v60  ;;  %1066 = vmatprep.subr.mxu0 %v637_v61  ;;  %v769_v60 = vld [vmem:[%s4206_s5 + $0xcf8] sm:$0xff]  ;;  %v539_v61 = vld [vmem:[%s4206_s5 + $0x5c8] sm:$0xff] }
 0x1a2   :  { %996 = vmatpush1.msra.mxu1 %v412_v62  ;;  %1067 = vmatpush1.msra.mxu0 %v636_v63  ;;  %v763_v62 = vld [vmem:[%s4206_s5 + $0xcc8] sm:$0xff]  ;;  %v538_v63 = vld [vmem:[%s4206_s5 + $0x5c0] sm:$0xff] }
 0x1a3   :  { %997 = vmatprep.subr.mxu1 %v406_v0  ;;  %1068 = vmatprep.subr.mxu0 %v630_v1  ;;  %v762_v0 = vld [vmem:[%s4206_s5 + $0xcc0] sm:$0xff]  ;;  %v532_v1 = vld [vmem:[%s4206_s5 + $0x590] sm:$0xff] }
 0x1a4   :  { %998 = vmatpush1.msra.mxu1 %v405_v2  ;;  %1069 = vmatpush1.msra.mxu0 %v629_v3  ;;  %v756_v2 = vld [vmem:[%s4206_s5 + $0xc90] sm:$0xff]  ;;  %v531_v3 = vld [vmem:[%s4206_s5 + $0x588] sm:$0xff] }
 0x1a5   :  { %999 = vmatprep.subr.mxu1 %v399_v4  ;;  %1070 = vmatprep.subr.mxu0 %v623_v5  ;;  %v755_v4 = vld [vmem:[%s4206_s5 + $0xc88] sm:$0xff]  ;;  %v525_v5 = vld [vmem:[%s4206_s5 + $0x558] sm:$0xff] }
 0x1a6   :  { %1000 = vmatpush1.msra.mxu1 %v398_v6  ;;  %1071 = vmatpush1.msra.mxu0 %v622_v7  ;;  %v749_v6 = vld [vmem:[%s4206_s5 + $0xc58] sm:$0xff]  ;;  %v524_v7 = vld [vmem:[%s4206_s5 + $0x550] sm:$0xff] }
 0x1a7   :  { %1001 = vmatprep.subr.mxu1 %v392_v8  ;;  %1072 = vmatprep.subr.mxu0 %v616_v9  ;;  %v748_v8 = vld [vmem:[%s4206_s5 + $0xc50] sm:$0xff]  ;;  %v518_v9 = vld [vmem:[%s4206_s5 + $0x520] sm:$0xff] }
 0x1a8   :  { %1002 = vmatpush1.msra.mxu1 %v391_v10  ;;  %1073 = vmatpush1.msra.mxu0 %v615_v11  ;;  %v742_v10 = vld [vmem:[%s4206_s5 + $0xc20] sm:$0xff]  ;;  %v517_v11 = vld [vmem:[%s4206_s5 + $0x518] sm:$0xff] }
 0x1a9   :  { %1003 = vmatprep.subr.mxu1 %v385_v15  ;;  %1074 = vmatprep.subr.mxu0 %v609_v18  ;;  %v741_v15 = vld [vmem:[%s4206_s5 + $0xc18] sm:$0xff]  ;;  %v511_v18 = vld [vmem:[%s4206_s5 + $0x4e8] sm:$0xff] }
 0x1aa   :  { %1004 = vmatpush1.msra.mxu1 %v384_v19  ;;  %1075 = vmatpush1.msra.mxu0 %v608_v20  ;;  %v735_v19 = vld [vmem:[%s4206_s5 + $0xbe8] sm:$0xff]  ;;  %v510_v20 = vld [vmem:[%s4206_s5 + $0x4e0] sm:$0xff] }
 0x1ab   :  { %1005 = vmatprep.subr.mxu1 %v378_v21  ;;  %1076 = vmatprep.subr.mxu0 %v602_v22  ;;  %v734_v21 = vld [vmem:[%s4206_s5 + $0xbe0] sm:$0xff]  ;;  %v504_v22 = vld [vmem:[%s4206_s5 + $0x4b0] sm:$0xff] }
 0x1ac   :  { %1006 = vmatpush1.msra.mxu1 %v377_v23  ;;  %1077 = vmatpush1.msra.mxu0 %v601_v24  ;;  %v728_v23 = vld [vmem:[%s4206_s5 + $0xbb0] sm:$0xff]  ;;  %v503_v24 = vld [vmem:[%s4206_s5 + $0x4a8] sm:$0xff] }
 0x1ad   :  { %1007 = vmatprep.subr.mxu1 %v371_v25  ;;  %1078 = vmatprep.subr.mxu0 %v595_v26  ;;  %v727_v25 = vld [vmem:[%s4206_s5 + $0xba8] sm:$0xff]  ;;  %v497_v26 = vld [vmem:[%s4206_s5 + $0x478] sm:$0xff] }
 0x1ae   :  { %1008 = vmatpush1.msra.mxu1 %v370_v27  ;;  %1079 = vmatpush1.msra.mxu0 %v594_v28  ;;  %v721_v27 = vld [vmem:[%s4206_s5 + $0xb78] sm:$0xff]  ;;  %v496_v28 = vld [vmem:[%s4206_s5 + $0x470] sm:$0xff] }
 0x1af   :  { %1009 = vmatprep.subr.mxu1 %v364_v29  ;;  %1080 = vmatprep.subr.mxu0 %v588_v34  ;;  %v720_v29 = vld [vmem:[%s4206_s5 + $0xb70] sm:$0xff]  ;;  %v490_v34 = vld [vmem:[%s4206_s5 + $0x440] sm:$0xff] }
 0x1b0   :  { %1010 = vmatpush1.msra.mxu1 %v363_v35  ;;  %1081 = vmatpush1.msra.mxu0 %v587_v36  ;;  %v714_v35 = vld [vmem:[%s4206_s5 + $0xb40] sm:$0xff]  ;;  %v489_v36 = vld [vmem:[%s4206_s5 + $0x438] sm:$0xff] }
 0x1b1   :  { %1011 = vmatprep.subr.mxu1 %v357_v37  ;;  %1082 = vmatprep.subr.mxu0 %v581_v38  ;;  %v713_v37 = vld [vmem:[%s4206_s5 + $0xb38] sm:$0xff]  ;;  %v483_v38 = vld [vmem:[%s4206_s5 + $0x408] sm:$0xff] }
 0x1b2   :  { %1012 = vmatpush1.msra.mxu1 %v356_v39  ;;  %1083 = vmatpush1.msra.mxu0 %v580_v40  ;;  %v707_v39 = vld [vmem:[%s4206_s5 + $0xb08] sm:$0xff]  ;;  %v482_v40 = vld [vmem:[%s4206_s5 + $0x400] sm:$0xff] }
 0x1b3   :  { %1013 = vmatprep.subr.mxu1 %v574_v41  ;;  %1084 = vmatprep.subr.mxu0 %v798_v42  ;;  %v706_v41 = vld [vmem:[%s4206_s5 + $0xb00] sm:$0xff]  ;;  %v476_v42 = vld [vmem:[%s4206_s5 + $0x3d0] sm:$0xff] }
 0x1b4   :  { %1014 = vmatpush2.msra.mxu1 %v573_v43  ;;  %1085 = vmatpush2.msra.mxu0 %v797_v44  ;;  %v700_v43 = vld [vmem:[%s4206_s5 + $0xad0] sm:$0xff]  ;;  %v475_v44 = vld [vmem:[%s4206_s5 + $0x3c8] sm:$0xff] }
 0x1b5   :  { %1015 = vmatprep.subr.mxu1 %v567_v45  ;;  %1086 = vmatprep.subr.mxu0 %v791_v46  ;;  %v699_v45 = vld [vmem:[%s4206_s5 + $0xac8] sm:$0xff]  ;;  %v469_v46 = vld [vmem:[%s4206_s5 + $0x398] sm:$0xff] }
 0x1b6   :  { %1016 = vmatpush2.msra.mxu1 %v566_v47  ;;  %1087 = vmatpush2.msra.mxu0 %v790_v48  ;;  %v693_v47 = vld [vmem:[%s4206_s5 + $0xa98] sm:$0xff]  ;;  %v468_v48 = vld [vmem:[%s4206_s5 + $0x390] sm:$0xff] }
 0x1b7   :  { %1017 = vmatprep.subr.mxu1 %v560_v49  ;;  %1088 = vmatprep.subr.mxu0 %v784_v50  ;;  %v692_v49 = vld [vmem:[%s4206_s5 + $0xa90] sm:$0xff] }
 0x1b8   :  { %1018 = vmatpush2.msra.mxu1 %v559_v51  ;;  %1089 = vmatpush2.msra.mxu0 %v783_v52  ;;  %v464_v50 = vld [vmem:[%s4206_s5 + $0x370] sm:$0xff]  ;;  %v463_v52 = vld [vmem:[%s4206_s5 + $0x368] sm:$0xff] }
 0x1b9   :  { %1019 = vmatprep.subr.mxu1 %v553_v53  ;;  %1090 = vmatprep.subr.mxu0 %v777_v54  ;;  %v688_v51 = vld [vmem:[%s4206_s5 + $0xa70] sm:$0xff]  ;;  %v687_v53 = vld [vmem:[%s4206_s5 + $0xa68] sm:$0xff]  ;;  %v457_v54 = vld [vmem:[%s4206_s5 + $0x338] sm:$0xff] }
 0x1ba   :  { %1020 = vmatpush2.msra.mxu1 %v552_v55  ;;  %1091 = vmatpush2.msra.mxu0 %v776_v56  ;;  %v681_v55 = vld [vmem:[%s4206_s5 + $0xa38] sm:$0xff]  ;;  %v456_v56 = vld [vmem:[%s4206_s5 + $0x330] sm:$0xff] }
 0x1bb   :  { %1021 = vmatprep.subr.mxu1 %v546_v57  ;;  %1092 = vmatprep.subr.mxu0 %v770_v58  ;;  %v680_v57 = vld [vmem:[%s4206_s5 + $0xa30] sm:$0xff]  ;;  %v450_v58 = vld [vmem:[%s4206_s5 + $0x300] sm:$0xff] }
 0x1bc   :  { %1022 = vmatpush2.msra.mxu1 %v545_v59  ;;  %1093 = vmatpush2.msra.mxu0 %v769_v60  ;;  %v674_v59 = vld [vmem:[%s4206_s5 + $0xa00] sm:$0xff]  ;;  %v449_v60 = vld [vmem:[%s4206_s5 + $0x2f8] sm:$0xff] }
 0x1bd   :  { %1023 = vmatprep.subr.mxu1 %v539_v61  ;;  %1094 = vmatprep.subr.mxu0 %v763_v62  ;;  %v673_v61 = vld [vmem:[%s4206_s5 + $0x9f8] sm:$0xff]  ;;  %v443_v62 = vld [vmem:[%s4206_s5 + $0x2c8] sm:$0xff] }
 0x1be   :  { %1024 = vmatpush2.msra.mxu1 %v538_v63  ;;  %1095 = vmatpush2.msra.mxu0 %v762_v0  ;;  %v667_v63 = vld [vmem:[%s4206_s5 + $0x9c8] sm:$0xff]  ;;  %v442_v0 = vld [vmem:[%s4206_s5 + $0x2c0] sm:$0xff] }
 0x1bf   :  { %1025 = vmatprep.subr.mxu1 %v532_v1  ;;  %1096 = vmatprep.subr.mxu0 %v756_v2  ;;  %v666_v1 = vld [vmem:[%s4206_s5 + $0x9c0] sm:$0xff]  ;;  %v436_v2 = vld [vmem:[%s4206_s5 + $0x290] sm:$0xff] }
 0x1c0   :  { %1026 = vmatpush2.msra.mxu1 %v531_v3  ;;  %1097 = vmatpush2.msra.mxu0 %v755_v4  ;;  %v660_v3 = vld [vmem:[%s4206_s5 + $0x990] sm:$0xff]  ;;  %v435_v4 = vld [vmem:[%s4206_s5 + $0x288] sm:$0xff] }
 0x1c1   :  { %1027 = vmatprep.subr.mxu1 %v525_v5  ;;  %1098 = vmatprep.subr.mxu0 %v749_v6  ;;  %v659_v5 = vld [vmem:[%s4206_s5 + $0x988] sm:$0xff]  ;;  %v429_v6 = vld [vmem:[%s4206_s5 + $0x258] sm:$0xff] }
 0x1c2   :  { %1028 = vmatpush2.msra.mxu1 %v524_v7  ;;  %1099 = vmatpush2.msra.mxu0 %v748_v8  ;;  %v653_v7 = vld [vmem:[%s4206_s5 + $0x958] sm:$0xff]  ;;  %v428_v8 = vld [vmem:[%s4206_s5 + $0x250] sm:$0xff] }
 0x1c3   :  { %1029 = vmatprep.subr.mxu1 %v518_v9  ;;  %1100 = vmatprep.subr.mxu0 %v742_v10  ;;  %v652_v9 = vld [vmem:[%s4206_s5 + $0x950] sm:$0xff]  ;;  %v422_v10 = vld [vmem:[%s4206_s5 + $0x220] sm:$0xff] }
 0x1c4   :  { %1030 = vmatpush2.msra.mxu1 %v517_v11  ;;  %1101 = vmatpush2.msra.mxu0 %v741_v15  ;;  %v646_v11 = vld [vmem:[%s4206_s5 + $0x920] sm:$0xff]  ;;  %v421_v15 = vld [vmem:[%s4206_s5 + $0x218] sm:$0xff] }
 0x1c5   :  { %1031 = vmatprep.subr.mxu1 %v511_v18  ;;  %1102 = vmatprep.subr.mxu0 %v735_v19  ;;  %v645_v18 = vld [vmem:[%s4206_s5 + $0x918] sm:$0xff]  ;;  %v415_v19 = vld [vmem:[%s4206_s5 + $0x1e8] sm:$0xff] }
 0x1c6   :  { %1032 = vmatpush2.msra.mxu1 %v510_v20  ;;  %1103 = vmatpush2.msra.mxu0 %v734_v21  ;;  %v639_v20 = vld [vmem:[%s4206_s5 + $0x8e8] sm:$0xff]  ;;  %v414_v21 = vld [vmem:[%s4206_s5 + $0x1e0] sm:$0xff] }
 0x1c7   :  { %1033 = vmatprep.subr.mxu1 %v504_v22  ;;  %1104 = vmatprep.subr.mxu0 %v728_v23  ;;  %v638_v22 = vld [vmem:[%s4206_s5 + $0x8e0] sm:$0xff]  ;;  %v408_v23 = vld [vmem:[%s4206_s5 + $0x1b0] sm:$0xff] }
 0x1c8   :  { %1034 = vmatpush2.msra.mxu1 %v503_v24  ;;  %1105 = vmatpush2.msra.mxu0 %v727_v25  ;;  %v632_v24 = vld [vmem:[%s4206_s5 + $0x8b0] sm:$0xff]  ;;  %v407_v25 = vld [vmem:[%s4206_s5 + $0x1a8] sm:$0xff] }
 0x1c9   :  { %1035 = vmatprep.subr.mxu1 %v497_v26  ;;  %1106 = vmatprep.subr.mxu0 %v721_v27  ;;  %v631_v26 = vld [vmem:[%s4206_s5 + $0x8a8] sm:$0xff]  ;;  %v401_v27 = vld [vmem:[%s4206_s5 + $0x178] sm:$0xff] }
 0x1ca   :  { %1036 = vmatpush2.msra.mxu1 %v496_v28  ;;  %1107 = vmatpush2.msra.mxu0 %v720_v29  ;;  %v625_v28 = vld [vmem:[%s4206_s5 + $0x878] sm:$0xff]  ;;  %v400_v29 = vld [vmem:[%s4206_s5 + $0x170] sm:$0xff] }
 0x1cb   :  { %1037 = vmatprep.subr.mxu1 %v490_v34  ;;  %1108 = vmatprep.subr.mxu0 %v714_v35  ;;  %v624_v34 = vld [vmem:[%s4206_s5 + $0x870] sm:$0xff]  ;;  %v394_v35 = vld [vmem:[%s4206_s5 + $0x140] sm:$0xff] }
 0x1cc   :  { %1038 = vmatpush2.msra.mxu1 %v489_v36  ;;  %1109 = vmatpush2.msra.mxu0 %v713_v37  ;;  %v618_v36 = vld [vmem:[%s4206_s5 + $0x840] sm:$0xff]  ;;  %v393_v37 = vld [vmem:[%s4206_s5 + $0x138] sm:$0xff] }
 0x1cd   :  { %1039 = vmatprep.subr.mxu1 %v483_v38  ;;  %1110 = vmatprep.subr.mxu0 %v707_v39  ;;  %v617_v38 = vld [vmem:[%s4206_s5 + $0x838] sm:$0xff]  ;;  %v387_v39 = vld [vmem:[%s4206_s5 + $0x108] sm:$0xff] }
 0x1ce   :  { %1040 = vmatpush2.msra.mxu1 %v482_v40  ;;  %1111 = vmatpush2.msra.mxu0 %v706_v41  ;;  %v611_v40 = vld [vmem:[%s4206_s5 + $0x808] sm:$0xff]  ;;  %v386_v41 = vld [vmem:[%s4206_s5 + $0x100] sm:$0xff] }
 0x1cf   :  { %1041 = vmatprep.subr.mxu1 %v476_v42  ;;  %1112 = vmatprep.subr.mxu0 %v700_v43  ;;  %v610_v42 = vld [vmem:[%s4206_s5 + $0x800] sm:$0xff]  ;;  %v380_v43 = vld [vmem:[%s4206_s5 + $0xd0] sm:$0xff] }
 0x1d0   :  { %1042 = vmatpush2.msra.mxu1 %v475_v44  ;;  %1113 = vmatpush2.msra.mxu0 %v699_v45  ;;  %v604_v44 = vld [vmem:[%s4206_s5 + $0x7d0] sm:$0xff]  ;;  %v379_v45 = vld [vmem:[%s4206_s5 + $0xc8] sm:$0xff] }
 0x1d1   :  { %1043 = vmatprep.subr.mxu1 %v469_v46  ;;  %1114 = vmatprep.subr.mxu0 %v693_v47  ;;  %v603_v46 = vld [vmem:[%s4206_s5 + $0x7c8] sm:$0xff]  ;;  %v373_v47 = vld [vmem:[%s4206_s5 + $0x98] sm:$0xff] }
 0x1d2   :  { %1044 = vmatpush2.msra.mxu1 %v468_v48  ;;  %1115 = vmatpush2.msra.mxu0 %v692_v49  ;;  %v597_v48 = vld [vmem:[%s4206_s5 + $0x798] sm:$0xff]  ;;  %v372_v49 = vld [vmem:[%s4206_s5 + $0x90] sm:$0xff] }
 0x1d3   :  { %1046 = vmatmul.mubr.f32.vlgmr.msra.gmra.mxu1 %v2931_v32  ;;  %1117 = vmatmul.mubr.f32.vlgmr.msra.gmra.mxu0 %v2933_v33 }
 0x1d4   :  { %1123 = vmatprep.subr.mxu1 %v464_v50  ;;  %1194 = vmatprep.subr.mxu0 %v688_v51  ;;  %v596_v50 = vld [vmem:[%s4206_s5 + $0x790] sm:$0xff]  ;;  %v366_v51 = vld [vmem:[%s4206_s5 + $0x60] sm:$0xff] }
 0x1d5   :  { %1124 = vmatpush1.msra.mxu1 %v463_v52  ;;  %1187 = vmatprep.mubr.f32.mxu1 %v2927_v30  ;;  %v590_v52 = vld [vmem:[%s4206_s5 + $0x760] sm:$0xff] }
 0x1d6   :  { %1195 = vmatpush1.msra.mxu0 %v687_v53  ;;  %1258 = vmatprep.mubr.f32.mxu0 %v2929_v31  ;;  %v365_v53 = vld [vmem:[%s4206_s5 + $0x58] sm:$0xff] }
 0x1d7   :  { %1125 = vmatprep.subr.mxu1 %v457_v54  ;;  %1196 = vmatprep.subr.mxu0 %v681_v55  ;;  %v589_v54 = vld [vmem:[%s4206_s5 + $0x758] sm:$0xff]  ;;  %v359_v55 = vld [vmem:[%s4206_s5 + $0x28] sm:$0xff] }
 0x1d8   :  { %1126 = vmatpush1.msra.mxu1 %v456_v56  ;;  %1197 = vmatpush1.msra.mxu0 %v680_v57  ;;  %v583_v56 = vld [vmem:[%s4206_s5 + $0x728] sm:$0xff]  ;;  %v358_v57 = vld [vmem:[%s4206_s5 + $0x20] sm:$0xff] }
 0x1d9   :  { %1127 = vmatprep.subr.mxu1 %v450_v58  ;;  %1198 = vmatprep.subr.mxu0 %v674_v59  ;;  %v582_v58 = vld [vmem:[%s4206_s5 + $0x720] sm:$0xff]  ;;  %v576_v59 = vld [vmem:[%s4206_s5 + $0x6f0] sm:$0xff] }
 0x1da   :  { %1128 = vmatpush1.msra.mxu1 %v449_v60  ;;  %1199 = vmatpush1.msra.mxu0 %v673_v61  ;;  %v800_v60 = vld [vmem:[%s4206_s5 + $0xdf0] sm:$0xff]  ;;  %v575_v61 = vld [vmem:[%s4206_s5 + $0x6e8] sm:$0xff] }
 0x1db   :  { %1129 = vmatprep.subr.mxu1 %v443_v62  ;;  %1200 = vmatprep.subr.mxu0 %v667_v63  ;;  %v799_v62 = vld [vmem:[%s4206_s5 + $0xde8] sm:$0xff]  ;;  %v569_v63 = vld [vmem:[%s4206_s5 + $0x6b8] sm:$0xff] }
 0x1dc   :  { %1130 = vmatpush1.msra.mxu1 %v442_v0  ;;  %1201 = vmatpush1.msra.mxu0 %v666_v1  ;;  %v793_v0 = vld [vmem:[%s4206_s5 + $0xdb8] sm:$0xff]  ;;  %v568_v1 = vld [vmem:[%s4206_s5 + $0x6b0] sm:$0xff] }
 0x1dd   :  { %1131 = vmatprep.subr.mxu1 %v436_v2  ;;  %1202 = vmatprep.subr.mxu0 %v660_v3  ;;  %v792_v2 = vld [vmem:[%s4206_s5 + $0xdb0] sm:$0xff]  ;;  %v562_v3 = vld [vmem:[%s4206_s5 + $0x680] sm:$0xff] }
 0x1de   :  { %1132 = vmatpush1.msra.mxu1 %v435_v4  ;;  %1203 = vmatpush1.msra.mxu0 %v659_v5  ;;  %v786_v4 = vld [vmem:[%s4206_s5 + $0xd80] sm:$0xff]  ;;  %v561_v5 = vld [vmem:[%s4206_s5 + $0x678] sm:$0xff] }
 0x1df   :  { %1133 = vmatprep.subr.mxu1 %v429_v6  ;;  %1204 = vmatprep.subr.mxu0 %v653_v7  ;;  %v785_v6 = vld [vmem:[%s4206_s5 + $0xd78] sm:$0xff]  ;;  %v555_v7 = vld [vmem:[%s4206_s5 + $0x648] sm:$0xff] }
 0x1e0   :  { %1134 = vmatpush1.msra.mxu1 %v428_v8  ;;  %1205 = vmatpush1.msra.mxu0 %v652_v9  ;;  %v779_v8 = vld [vmem:[%s4206_s5 + $0xd48] sm:$0xff]  ;;  %v554_v9 = vld [vmem:[%s4206_s5 + $0x640] sm:$0xff] }
 0x1e1   :  { %1135 = vmatprep.subr.mxu1 %v422_v10  ;;  %1206 = vmatprep.subr.mxu0 %v646_v11  ;;  %v778_v10 = vld [vmem:[%s4206_s5 + $0xd40] sm:$0xff]  ;;  %v548_v11 = vld [vmem:[%s4206_s5 + $0x610] sm:$0xff] }
 0x1e2   :  { %1136 = vmatpush1.msra.mxu1 %v421_v15  ;;  %1207 = vmatpush1.msra.mxu0 %v645_v18  ;;  %v772_v15 = vld [vmem:[%s4206_s5 + $0xd10] sm:$0xff]  ;;  %v547_v18 = vld [vmem:[%s4206_s5 + $0x608] sm:$0xff] }
 0x1e3   :  { %1137 = vmatprep.subr.mxu1 %v415_v19  ;;  %1208 = vmatprep.subr.mxu0 %v639_v20  ;;  %v771_v19 = vld [vmem:[%s4206_s5 + $0xd08] sm:$0xff]  ;;  %v541_v20 = vld [vmem:[%s4206_s5 + $0x5d8] sm:$0xff] }
 0x1e4   :  { %1138 = vmatpush1.msra.mxu1 %v414_v21  ;;  %1209 = vmatpush1.msra.mxu0 %v638_v22  ;;  %v765_v21 = vld [vmem:[%s4206_s5 + $0xcd8] sm:$0xff]  ;;  %v540_v22 = vld [vmem:[%s4206_s5 + $0x5d0] sm:$0xff] }
 0x1e5   :  { %1139 = vmatprep.subr.mxu1 %v408_v23  ;;  %1210 = vmatprep.subr.mxu0 %v632_v24  ;;  %v764_v23 = vld [vmem:[%s4206_s5 + $0xcd0] sm:$0xff]  ;;  %v534_v24 = vld [vmem:[%s4206_s5 + $0x5a0] sm:$0xff] }
 0x1e6   :  { %1140 = vmatpush1.msra.mxu1 %v407_v25  ;;  %1211 = vmatpush1.msra.mxu0 %v631_v26  ;;  %v758_v25 = vld [vmem:[%s4206_s5 + $0xca0] sm:$0xff]  ;;  %v533_v26 = vld [vmem:[%s4206_s5 + $0x598] sm:$0xff] }
 0x1e7   :  { %1141 = vmatprep.subr.mxu1 %v401_v27  ;;  %1212 = vmatprep.subr.mxu0 %v625_v28  ;;  %v757_v27 = vld [vmem:[%s4206_s5 + $0xc98] sm:$0xff]  ;;  %v527_v28 = vld [vmem:[%s4206_s5 + $0x568] sm:$0xff] }
 0x1e8   :  { %1142 = vmatpush1.msra.mxu1 %v400_v29  ;;  %1213 = vmatpush1.msra.mxu0 %v624_v34  ;;  %v751_v29 = vld [vmem:[%s4206_s5 + $0xc68] sm:$0xff]  ;;  %v526_v34 = vld [vmem:[%s4206_s5 + $0x560] sm:$0xff] }
 0x1e9   :  { %1143 = vmatprep.subr.mxu1 %v394_v35  ;;  %1214 = vmatprep.subr.mxu0 %v618_v36  ;;  %v750_v35 = vld [vmem:[%s4206_s5 + $0xc60] sm:$0xff]  ;;  %v520_v36 = vld [vmem:[%s4206_s5 + $0x530] sm:$0xff] }
 0x1ea   :  { %1144 = vmatpush1.msra.mxu1 %v393_v37  ;;  %1215 = vmatpush1.msra.mxu0 %v617_v38  ;;  %v744_v37 = vld [vmem:[%s4206_s5 + $0xc30] sm:$0xff]  ;;  %v519_v38 = vld [vmem:[%s4206_s5 + $0x528] sm:$0xff] }
 0x1eb   :  { %1145 = vmatprep.subr.mxu1 %v387_v39  ;;  %1216 = vmatprep.subr.mxu0 %v611_v40  ;;  %v743_v39 = vld [vmem:[%s4206_s5 + $0xc28] sm:$0xff]  ;;  %v513_v40 = vld [vmem:[%s4206_s5 + $0x4f8] sm:$0xff] }
 0x1ec   :  { %1146 = vmatpush1.msra.mxu1 %v386_v41  ;;  %1217 = vmatpush1.msra.mxu0 %v610_v42  ;;  %v737_v41 = vld [vmem:[%s4206_s5 + $0xbf8] sm:$0xff]  ;;  %v512_v42 = vld [vmem:[%s4206_s5 + $0x4f0] sm:$0xff] }
 0x1ed   :  { %1147 = vmatprep.subr.mxu1 %v380_v43  ;;  %1218 = vmatprep.subr.mxu0 %v604_v44  ;;  %v736_v43 = vld [vmem:[%s4206_s5 + $0xbf0] sm:$0xff]  ;;  %v506_v44 = vld [vmem:[%s4206_s5 + $0x4c0] sm:$0xff] }
 0x1ee   :  { %1148 = vmatpush1.msra.mxu1 %v379_v45  ;;  %1219 = vmatpush1.msra.mxu0 %v603_v46  ;;  %v730_v45 = vld [vmem:[%s4206_s5 + $0xbc0] sm:$0xff]  ;;  %v505_v46 = vld [vmem:[%s4206_s5 + $0x4b8] sm:$0xff] }
 0x1ef   :  { %1149 = vmatprep.subr.mxu1 %v373_v47  ;;  %1220 = vmatprep.subr.mxu0 %v597_v48  ;;  %v729_v47 = vld [vmem:[%s4206_s5 + $0xbb8] sm:$0xff]  ;;  %v499_v48 = vld [vmem:[%s4206_s5 + $0x488] sm:$0xff] }
 0x1f0   :  { %1150 = vmatpush1.msra.mxu1 %v372_v49  ;;  %1221 = vmatpush1.msra.mxu0 %v596_v50  ;;  %v723_v49 = vld [vmem:[%s4206_s5 + $0xb88] sm:$0xff]  ;;  %v498_v50 = vld [vmem:[%s4206_s5 + $0x480] sm:$0xff] }
 0x1f1   :  { %1151 = vmatprep.subr.mxu1 %v366_v51  ;;  %1222 = vmatprep.subr.mxu0 %v590_v52  ;;  %v722_v51 = vld [vmem:[%s4206_s5 + $0xb80] sm:$0xff]  ;;  %v492_v52 = vld [vmem:[%s4206_s5 + $0x450] sm:$0xff] }
 0x1f2   :  { %1152 = vmatpush1.msra.mxu1 %v365_v53  ;;  %1223 = vmatpush1.msra.mxu0 %v589_v54  ;;  %v716_v53 = vld [vmem:[%s4206_s5 + $0xb50] sm:$0xff]  ;;  %v491_v54 = vld [vmem:[%s4206_s5 + $0x448] sm:$0xff] }
 0x1f3   :  { %1153 = vmatprep.subr.mxu1 %v359_v55  ;;  %1224 = vmatprep.subr.mxu0 %v583_v56  ;;  %v715_v55 = vld [vmem:[%s4206_s5 + $0xb48] sm:$0xff]  ;;  %v485_v56 = vld [vmem:[%s4206_s5 + $0x418] sm:$0xff] }
 0x1f4   :  { %1154 = vmatpush1.msra.mxu1 %v358_v57  ;;  %1225 = vmatpush1.msra.mxu0 %v582_v58  ;;  %v709_v57 = vld [vmem:[%s4206_s5 + $0xb18] sm:$0xff]  ;;  %v484_v58 = vld [vmem:[%s4206_s5 + $0x410] sm:$0xff] }
 0x1f5   :  { %1155 = vmatprep.subr.mxu1 %v576_v59  ;;  %1226 = vmatprep.subr.mxu0 %v800_v60  ;;  %v708_v59 = vld [vmem:[%s4206_s5 + $0xb10] sm:$0xff]  ;;  %v478_v60 = vld [vmem:[%s4206_s5 + $0x3e0] sm:$0xff] }
 0x1f6   :  { %1156 = vmatpush2.msra.mxu1 %v575_v61  ;;  %1227 = vmatpush2.msra.mxu0 %v799_v62  ;;  %v702_v61 = vld [vmem:[%s4206_s5 + $0xae0] sm:$0xff]  ;;  %v477_v62 = vld [vmem:[%s4206_s5 + $0x3d8] sm:$0xff] }
 0x1f7   :  { %1157 = vmatprep.subr.mxu1 %v569_v63  ;;  %1228 = vmatprep.subr.mxu0 %v793_v0  ;;  %v701_v63 = vld [vmem:[%s4206_s5 + $0xad8] sm:$0xff]  ;;  %v471_v0 = vld [vmem:[%s4206_s5 + $0x3a8] sm:$0xff] }
 0x1f8   :  { %1158 = vmatpush2.msra.mxu1 %v568_v1  ;;  %1229 = vmatpush2.msra.mxu0 %v792_v2  ;;  %v695_v1 = vld [vmem:[%s4206_s5 + $0xaa8] sm:$0xff]  ;;  %v470_v2 = vld [vmem:[%s4206_s5 + $0x3a0] sm:$0xff] }
 0x1f9   :  { %1159 = vmatprep.subr.mxu1 %v562_v3  ;;  %1230 = vmatprep.subr.mxu0 %v786_v4  ;;  %v694_v3 = vld [vmem:[%s4206_s5 + $0xaa0] sm:$0xff]  ;;  %v577_v4 = vld [vmem:[%s4206_s5 + $0x6f8] sm:$0xff] }
 0x1fa   :  { %1160 = vmatpush2.msra.mxu1 %v561_v5  ;;  %1231 = vmatpush2.msra.mxu0 %v785_v6  ;;  %v801_v5 = vld [vmem:[%s4206_s5 + $0xdf8] sm:$0xff] }
 0x1fb   :  { %1161 = vmatprep.subr.mxu1 %v555_v7  ;;  %1232 = vmatprep.subr.mxu0 %v779_v8  ;;  %v465_v6 = vld [vmem:[%s4206_s5 + $0x378] sm:$0xff]  ;;  %v570_v8 = vld [vmem:[%s4206_s5 + $0x6c0] sm:$0xff] }
 0x1fc   :  { %1162 = vmatpush2.msra.mxu1 %v554_v9  ;;  %1233 = vmatpush2.msra.mxu0 %v778_v10  ;;  %v689_v7 = vld [vmem:[%s4206_s5 + $0xa78] sm:$0xff]  ;;  %v794_v9 = vld [vmem:[%s4206_s5 + $0xdc0] sm:$0xff] }
 0x1fd   :  { %1163 = vmatprep.subr.mxu1 %v548_v11  ;;  %1234 = vmatprep.subr.mxu0 %v772_v15  ;;  %v458_v10 = vld [vmem:[%s4206_s5 + $0x340] sm:$0xff]  ;;  %v563_v15 = vld [vmem:[%s4206_s5 + $0x688] sm:$0xff] }
 0x1fe   :  { %1164 = vmatpush2.msra.mxu1 %v547_v18  ;;  %1235 = vmatpush2.msra.mxu0 %v771_v19  ;;  %v682_v11 = vld [vmem:[%s4206_s5 + $0xa40] sm:$0xff]  ;;  %v787_v18 = vld [vmem:[%s4206_s5 + $0xd88] sm:$0xff] }
 0x1ff   :  { %1165 = vmatprep.subr.mxu1 %v541_v20  ;;  %1236 = vmatprep.subr.mxu0 %v765_v21  ;;  %v675_v19 = vld [vmem:[%s4206_s5 + $0xa08] sm:$0xff]  ;;  %v780_v20 = vld [vmem:[%s4206_s5 + $0xd50] sm:$0xff] }
 0x200   :  { %1166 = vmatpush2.msra.mxu1 %v540_v22  ;;  %1237 = vmatpush2.msra.mxu0 %v764_v23  ;;  %v444_v21 = vld [vmem:[%s4206_s5 + $0x2d0] sm:$0xff]  ;;  %v549_v23 = vld [vmem:[%s4206_s5 + $0x618] sm:$0xff] }
 0x201   :  { %1167 = vmatprep.subr.mxu1 %v534_v24  ;;  %1238 = vmatprep.subr.mxu0 %v758_v25  ;;  %v668_v22 = vld [vmem:[%s4206_s5 + $0x9d0] sm:$0xff]  ;;  %v773_v24 = vld [vmem:[%s4206_s5 + $0xd18] sm:$0xff] }
 0x202   :  { %1168 = vmatpush2.msra.mxu1 %v533_v26  ;;  %1239 = vmatpush2.msra.mxu0 %v757_v27  ;;  %v437_v25 = vld [vmem:[%s4206_s5 + $0x298] sm:$0xff]  ;;  %v542_v27 = vld [vmem:[%s4206_s5 + $0x5e0] sm:$0xff] }
 0x203   :  { %1169 = vmatprep.subr.mxu1 %v527_v28  ;;  %1240 = vmatprep.subr.mxu0 %v751_v29  ;;  %v661_v26 = vld [vmem:[%s4206_s5 + $0x998] sm:$0xff]  ;;  %v766_v28 = vld [vmem:[%s4206_s5 + $0xce0] sm:$0xff] }
 0x204   :  { %1170 = vmatpush2.msra.mxu1 %v526_v34  ;;  %1241 = vmatpush2.msra.mxu0 %v750_v35  ;;  %v430_v29 = vld [vmem:[%s4206_s5 + $0x260] sm:$0xff]  ;;  %v535_v35 = vld [vmem:[%s4206_s5 + $0x5a8] sm:$0xff] }
 0x205   :  { %1171 = vmatprep.subr.mxu1 %v520_v36  ;;  %1242 = vmatprep.subr.mxu0 %v744_v37  ;;  %v654_v34 = vld [vmem:[%s4206_s5 + $0x960] sm:$0xff]  ;;  %v759_v36 = vld [vmem:[%s4206_s5 + $0xca8] sm:$0xff] }
 0x206   :  { %1172 = vmatpush2.msra.mxu1 %v519_v38  ;;  %1243 = vmatpush2.msra.mxu0 %v743_v39  ;;  %v423_v37 = vld [vmem:[%s4206_s5 + $0x228] sm:$0xff]  ;;  %v528_v39 = vld [vmem:[%s4206_s5 + $0x570] sm:$0xff] }
 0x207   :  { %1173 = vmatprep.subr.mxu1 %v513_v40  ;;  %1244 = vmatprep.subr.mxu0 %v737_v41  ;;  %v647_v38 = vld [vmem:[%s4206_s5 + $0x928] sm:$0xff]  ;;  %v752_v40 = vld [vmem:[%s4206_s5 + $0xc70] sm:$0xff] }
 0x208   :  { %1174 = vmatpush2.msra.mxu1 %v512_v42  ;;  %1245 = vmatpush2.msra.mxu0 %v736_v43  ;;  %v416_v41 = vld [vmem:[%s4206_s5 + $0x1f0] sm:$0xff]  ;;  %v521_v43 = vld [vmem:[%s4206_s5 + $0x538] sm:$0xff] }
 0x209   :  { %1175 = vmatprep.subr.mxu1 %v506_v44  ;;  %1246 = vmatprep.subr.mxu0 %v730_v45  ;;  %v640_v42 = vld [vmem:[%s4206_s5 + $0x8f0] sm:$0xff]  ;;  %v745_v44 = vld [vmem:[%s4206_s5 + $0xc38] sm:$0xff] }
 0x20a   :  { %1176 = vmatpush2.msra.mxu1 %v505_v46  ;;  %1247 = vmatpush2.msra.mxu0 %v729_v47  ;;  %v409_v45 = vld [vmem:[%s4206_s5 + $0x1b8] sm:$0xff]  ;;  %v514_v47 = vld [vmem:[%s4206_s5 + $0x500] sm:$0xff] }
 0x20b   :  { %1177 = vmatprep.subr.mxu1 %v499_v48  ;;  %1248 = vmatprep.subr.mxu0 %v723_v49  ;;  %v633_v46 = vld [vmem:[%s4206_s5 + $0x8b8] sm:$0xff]  ;;  %v738_v48 = vld [vmem:[%s4206_s5 + $0xc00] sm:$0xff] }
 0x20c   :  { %1178 = vmatpush2.msra.mxu1 %v498_v50  ;;  %1249 = vmatpush2.msra.mxu0 %v722_v51  ;;  %v402_v49 = vld [vmem:[%s4206_s5 + $0x180] sm:$0xff]  ;;  %v507_v51 = vld [vmem:[%s4206_s5 + $0x4c8] sm:$0xff] }
 0x20d   :  { %1179 = vmatprep.subr.mxu1 %v492_v52  ;;  %1250 = vmatprep.subr.mxu0 %v716_v53  ;;  %v626_v50 = vld [vmem:[%s4206_s5 + $0x880] sm:$0xff]  ;;  %v731_v52 = vld [vmem:[%s4206_s5 + $0xbc8] sm:$0xff] }
 0x20e   :  { %1180 = vmatpush2.msra.mxu1 %v491_v54  ;;  %1251 = vmatpush2.msra.mxu0 %v715_v55  ;;  %v395_v53 = vld [vmem:[%s4206_s5 + $0x148] sm:$0xff]  ;;  %v500_v55 = vld [vmem:[%s4206_s5 + $0x490] sm:$0xff] }
 0x20f   :  { %1181 = vmatprep.subr.mxu1 %v485_v56  ;;  %1252 = vmatprep.subr.mxu0 %v709_v57  ;;  %v619_v54 = vld [vmem:[%s4206_s5 + $0x848] sm:$0xff]  ;;  %v724_v56 = vld [vmem:[%s4206_s5 + $0xb90] sm:$0xff] }
 0x210   :  { %1182 = vmatpush2.msra.mxu1 %v484_v58  ;;  %1253 = vmatpush2.msra.mxu0 %v708_v59  ;;  %v388_v57 = vld [vmem:[%s4206_s5 + $0x110] sm:$0xff]  ;;  %v493_v59 = vld [vmem:[%s4206_s5 + $0x458] sm:$0xff] }
 0x211   :  { %1183 = vmatprep.subr.mxu1 %v478_v60  ;;  %1254 = vmatprep.subr.mxu0 %v702_v61  ;;  %v612_v58 = vld [vmem:[%s4206_s5 + $0x810] sm:$0xff]  ;;  %v717_v60 = vld [vmem:[%s4206_s5 + $0xb58] sm:$0xff] }
 0x212   :  { %1184 = vmatpush2.msra.mxu1 %v477_v62  ;;  %1255 = vmatpush2.msra.mxu0 %v701_v63  ;;  %v381_v61 = vld [vmem:[%s4206_s5 + $0xd8] sm:$0xff]  ;;  %v486_v63 = vld [vmem:[%s4206_s5 + $0x420] sm:$0xff] }
 0x213   :  { %1185 = vmatprep.subr.mxu1 %v471_v0  ;;  %1256 = vmatprep.subr.mxu0 %v695_v1  ;;  %v605_v62 = vld [vmem:[%s4206_s5 + $0x7d8] sm:$0xff]  ;;  %v710_v0 = vld [vmem:[%s4206_s5 + $0xb20] sm:$0xff] }
 0x214   :  { %1186 = vmatpush2.msra.mxu1 %v470_v2  ;;  %1257 = vmatpush2.msra.mxu0 %v694_v3  ;;  %v374_v1 = vld [vmem:[%s4206_s5 + $0xa0] sm:$0xff]  ;;  %v479_v3 = vld [vmem:[%s4206_s5 + $0x3e8] sm:$0xff] }
 0x215   :  { %1188 = vmatmul.mubr.f32.vlgmr.msra.gmra.mxu1 %v2931_v32  ;;  %1259 = vmatmul.mubr.f32.vlgmr.msra.gmra.mxu0 %v2933_v33  ;;  %v598_v2 = vld [vmem:[%s4206_s5 + $0x7a0] sm:$0xff] }
 0x216   :  { %1928 = vmatprep.subr.mxu1 %v577_v4  ;;  %1963 = vmatprep.subr.mxu0 %v801_v5  ;;  %v703_v4 = vld [vmem:[%s4206_s5 + $0xae8] sm:$0xff] }
 0x217   :  { %1929 = vmatpush3.msra.mxu1 %v465_v6  ;;  %1329 = vmatprep.mubr.f32.mxu1 %v2927_v30  ;;  %v451_v30 = vld [vmem:[%s4206_s5 + $0x308] sm:$0xff] }
 0x218   :  { %1964 = vmatpush3.msra.mxu0 %v689_v7  ;;  %1399 = vmatprep.mubr.f32.mxu0 %v2929_v31  ;;  %v556_v31 = vld [vmem:[%s4206_s5 + $0x650] sm:$0xff]  ;;  %v367_v5 = vld [vmem:[%s4206_s5 + $0x68] sm:$0xff] }
 0x219   :  { %1930 = vmatprep.subr.mxu1 %v570_v8  ;;  %1965 = vmatprep.subr.mxu0 %v794_v9  ;;  %v591_v6 = vld [vmem:[%s4206_s5 + $0x768] sm:$0xff]  ;;  %v472_v7 = vld [vmem:[%s4206_s5 + $0x3b0] sm:$0xff] }
 0x21a   :  { %1931 = vmatpush3.msra.mxu1 %v458_v10  ;;  %1966 = vmatpush3.msra.mxu0 %v682_v11  ;;  %v696_v8 = vld [vmem:[%s4206_s5 + $0xab0] sm:$0xff]  ;;  %v3908_v11 = vld [vmem:[%s4207_s6] sm:$0x7f] }
 0x21b   :  { %1932 = vmatprep.subr.mxu1 %v563_v15  ;;  %1967 = vmatprep.subr.mxu0 %v787_v18  ;;  %v360_v9 = vld [vmem:[%s4206_s5 + $0x30] sm:$0xff]  ;;  %v807_v15 = vrot.slane %v3908_v11, %v190_v13  ;;  %v811_v18 = vrot.slane %v3908_v11, %v194_v16 }
 0x21c   :  { %1933 = vmatpush3.msra.mxu1 %v451_v30  ;;  %1968 = vmatpush3.msra.mxu0 %v675_v19  ;;  %v584_v10 = vld [vmem:[%s4206_s5 + $0x730] sm:$0xff] }
 0x21d   :  { %1934 = vmatprep.subr.mxu1 %v556_v31  ;;  %1969 = vmatprep.subr.mxu0 %v780_v20  ;;  %v1911_v16 = vld [vmem:[%s4208_s7 + $0x70] sm:$0xff] }
 0x21e   :  { %1935 = vmatpush3.msra.mxu1 %v444_v21  ;;  %1970 = vmatpush3.msra.mxu0 %v668_v22  ;;  %2009 = vlog2.f32 %v1911_v16  ;;  %v1906_v16 = vld [vmem:[%s4208_s7 + $0x48] sm:$0xff] }
 0x21f   :  { %1936 = vmatprep.subr.mxu1 %v549_v23  ;;  %1971 = vmatprep.subr.mxu0 %v773_v24  ;;  %v815_v24 = vrot.slane %v3908_v11, %v198_v14 }
 0x220   :  { %1937 = vmatpush3.msra.mxu1 %v437_v25  ;;  %1972 = vmatpush3.msra.mxu0 %v661_v26  ;;  %v1455_v25 = vld [vmem:[%s4208_s7] sm:$0xff]  ;;  %v1912_v26 = vld [vmem:[%s4208_s7 + $0x78] sm:$0xff] }
 0x221   :  { %1938 = vmatprep.subr.mxu1 %v542_v27  ;;  %1973 = vmatprep.subr.mxu0 %v766_v28  ;;  %v819_v27 = vrot.slane %v3908_v11, %v202_v17  ;;  %2011 = vlog2.f32 %v1455_v25 }
 0x222   :  { %1939 = vmatpush3.msra.mxu1 %v430_v29  ;;  %1974 = vmatpush3.msra.mxu0 %v654_v34  ;;  %2013 = vlog2.f32 %v1912_v26 }
 0x223   :  { %1940 = vmatprep.subr.mxu1 %v535_v35  ;;  %1975 = vmatprep.subr.mxu0 %v759_v36 }
 0x224   :  { %1941 = vmatpush3.msra.mxu1 %v423_v37  ;;  %1976 = vmatpush3.msra.mxu0 %v647_v38 }
 0x225   :  { %1942 = vmatprep.subr.mxu1 %v528_v39  ;;  %1977 = vmatprep.subr.mxu0 %v752_v40 }
 0x226   :  { %1943 = vmatpush3.msra.mxu1 %v416_v41  ;;  %1978 = vmatpush3.msra.mxu0 %v640_v42 }
 0x227   :  { %1944 = vmatprep.subr.mxu1 %v521_v43  ;;  %1979 = vmatprep.subr.mxu0 %v745_v44  ;;  %v1456_v44 = vld [vmem:[%s4208_s7 + $0x8] sm:$0xff] }
 0x228   :  { %1945 = vmatpush3.msra.mxu1 %v409_v45  ;;  %1980 = vmatpush3.msra.mxu0 %v633_v46  ;;  %2015 = vlog2.f32 %v1456_v44  ;;  %v1916_v44 = vld [vmem:[%s4208_s7 + $0x98] sm:$0xff] }
 0x229   :  { %1946 = vmatprep.subr.mxu1 %v514_v47  ;;  %1981 = vmatprep.subr.mxu0 %v738_v48  ;;  %v1918_v48 = vld [vmem:[%s4208_s7 + $0xa8] sm:$0xff] }
 0x22a   :  { %1947 = vmatpush3.msra.mxu1 %v402_v49  ;;  %1982 = vmatpush3.msra.mxu0 %v626_v50  ;;  %v1919_v50 = vld [vmem:[%s4208_s7 + $0xb0] sm:$0xff]  ;;  %2017 = vlog2.f32 %v1918_v48  ;;  %v1459_v48 = vld [vmem:[%s4208_s7 + $0x20] sm:$0xff] }
 0x22b   :  { %1948 = vmatprep.subr.mxu1 %v507_v51  ;;  %1983 = vmatprep.subr.mxu0 %v731_v52  ;;  %v2010_v17 = vpop.eup %2009  ;;  %v1904_v52 = vld [vmem:[%s4208_s7 + $0x38] sm:$0xff] }
 0x22c   :  { %1949 = vmatpush3.msra.mxu1 %v395_v53  ;;  %1984 = vmatpush3.msra.mxu0 %v619_v54  ;;  %v1669_v43 = vmul.f32 0.6931472, %v2010_v17  ;;  %v1905_v53 = vld [vmem:[%s4208_s7 + $0x40] sm:$0xff] }
 0x22d   :  { %1950 = vmatprep.subr.mxu1 %v500_v55  ;;  %1985 = vmatprep.subr.mxu0 %v724_v56  ;;  %v1913_v55 = vld [vmem:[%s4208_s7 + $0x80] sm:$0xff] }
 0x22e   :  { %1951 = vmatpush3.msra.mxu1 %v388_v57  ;;  %1986 = vmatpush3.msra.mxu0 %v612_v58  ;;  %v2012_v41 = vpop.eup %2011  ;;  %v1682_v47 = vsub.f32 0.0, %v1669_v43  ;;  %v1457_v58 = vld [vmem:[%s4208_s7 + $0x10] sm:$0xff] }
 0x22f   :  { %1952 = vmatprep.subr.mxu1 %v493_v59  ;;  %1987 = vmatprep.subr.mxu0 %v717_v60  ;;  %v2014_v42 = vpop.eup %2013  ;;  %v1463_v45 = vmul.f32 0.6931472, %v2012_v41 }
 0x230   :  { %1953 = vmatpush3.msra.mxu1 %v381_v61  ;;  %1988 = vmatpush3.msra.mxu0 %v605_v62  ;;  %v1671_v46 = vmul.f32 0.6931472, %v2014_v42  ;;  %2019 = vlog2.f32 %v1682_v47  ;;  %v1914_v62 = vld [vmem:[%s4208_s7 + $0x88] sm:$0xff] }
 0x231   :  { %1954 = vmatprep.subr.mxu1 %v486_v63  ;;  %1989 = vmatprep.subr.mxu0 %v710_v0  ;;  %v1476_v49 = vsub.f32 0.0, %v1463_v45  ;;  %2021 = vlog2.f32 %v1919_v50 }
 0x232   :  { %1955 = vmatpush3.msra.mxu1 %v374_v1  ;;  %1990 = vmatpush3.msra.mxu0 %v598_v2  ;;  %v1683_v51 = vsub.f32 0.0, %v1671_v46 }
 0x233   :  { %1956 = vmatprep.subr.mxu1 %v479_v3  ;;  %1991 = vmatprep.subr.mxu0 %v703_v4  ;;  %2023 = vlog2.f32 %v1476_v49 }
 0x234   :  { %1957 = vmatpush3.msra.mxu1 %v367_v5  ;;  %1992 = vmatpush3.msra.mxu0 %v591_v6  ;;  %2025 = vlog2.f32 %v1683_v51  ;;  %v1460_v51 = vld [vmem:[%s4208_s7 + $0x28] sm:$0xff] }
 0x235   :  { %1958 = vmatprep.subr.mxu1 %v472_v7  ;;  %1993 = vmatprep.subr.mxu0 %v696_v8  ;;  %2027 = vlog2.f32 %v1904_v52  ;;  %v2016_v54 = vpop.eup %2015  ;;  %v1458_v7 = vld [vmem:[%s4208_s7 + $0x18] sm:$0xff] }
 0x236   :  { %1959 = vmatpush3.msra.mxu1 %v360_v9  ;;  %1994 = vmatpush3.msra.mxu0 %v584_v10  ;;  %2029 = vlog2.f32 %v1905_v53  ;;  %v1465_v59 = vmul.f32 0.6931472, %v2016_v54  ;;  %v822_v54 = vsub.s32 4, %v2910_v12 }
 0x237   :  { %1330 = vmatmul.mubr.f32.vlgmr.msra.gmra.mxu1 %v2931_v32  ;;  %1400 = vmatmul.mubr.f32.vlgmr.msra.gmra.mxu0 %v2933_v33  ;;  %v2018_v56 = vpop.eup %2017  ;;  %2031 = vlog2.f32 %v1913_v55 }
 0x238   :  { %v1772_v63 = vmul.f32 0.6931472, %v2018_v56  ;;  %2033 = vlog2.f32 %v1457_v58  ;;  %v1477_v2 = vsub.f32 0.0, %v1465_v59  ;;  %v1922_v58 = vld [vmem:[%s4208_s7 + $0xc8] sm:$0xff] }
 0x239   :  { %2035 = vlog2.f32 %v1914_v62 }
 0x23a   :  { %v1785_v8 = vsub.f32 0.0, %v1772_v63  ;;  %2037 = vlog2.f32 %v1477_v2  ;;  %v1923_v63 = vld [vmem:[%s4208_s7 + $0xd0] sm:$0xff]  ;;  %v823_v2 = vrot.slane %v3908_v11, %v822_v54 }
 0x23b   :  { %2039 = vlog2.f32 %v1458_v7  ;;  %v1909_v7 = vld [vmem:[%s4208_s7 + $0x60] sm:$0xff] }
 0x23c   :  { %2041 = vlog2.f32 %v1785_v8 }
 0x23d   :  { %v2020_v57 = vpop.eup %2019 }
 0x23e   :  { %v2022_v60 = vpop.eup %2021  ;;  %v1690_v1 = vmul.f32 0.6931472, %v2020_v57 }
 0x23f   :  { %v1774_v5 = vmul.f32 0.6931472, %v2022_v60  ;;  %v826_v60 = vsub.s32 5, %v2910_v12 }
 0x240   :  { %v2024_v61 = vpop.eup %2023  ;;  %v1703_v10 = vsub.f32 0.0, %v1690_v1 }
 0x241   :  { %v2026_v0 = vpop.eup %2025  ;;  %v1484_v4 = vmul.f32 0.6931472, %v2024_v61 }
 0x242   :  { %v2028_v3 = vpop.eup %2027  ;;  %v1692_v6 = vmul.f32 0.6931472, %v2026_v0 }
 0x243   :  { %v2030_v9 = vpop.eup %2029 }
 0x244   :  { %v2032_v26 = vpop.eup %2031 }
 0x252   :  { %v905_v30 = vpop.f32.mrf.mxu1  ;;  %v976_v19 = vpop.f32.mrf.mxu0 }
 0x253   :  { %v906_v31 = vadd.f32 %v905_v30, %v807_v15  ;;  %v1920_v15 = vld [vmem:[%s4208_s7 + $0xb8] sm:$0xff]  ;;  %v1497_v30 = vsub.f32 0.0, %v1484_v4 }
 0x254   :  { %v907_v20 = vpop.f32.mrf.mxu1  ;;  %v978_v21 = vpop.f32.mrf.mxu0  ;;  %2043 = vlog2.f32 %v1920_v15 }
 0x255   :  { %v3916_v32 = vadd.f32 %v976_v19, %v906_v31  ;;  %v908_v33 = vadd.f32 %v907_v20, %v811_v18  ;;  %v1566_v18 = vmul.f32 0.6931472, %v2028_v3  ;;  %v1786_v19 = vsub.f32 0.0, %v1774_v5  ;;  %v1908_v3 = vld [vmem:[%s4208_s7 + $0x58] sm:$0xff] }
 0x256   :  { %v1704_v31 = vsub.f32 0.0, %v1692_v6  ;;  %v1568_v20 = vmul.f32 0.6931472, %v2030_v9  ;;  %v1504_v25 = vmul.f32 0.2, %v1497_v30  ;;  %v827_v9 = vrot.slane %v3908_v11, %v826_v60 }
 0x257   :  { %v1405_v22 = vmax.f32 %v3916_v32, 0.0  ;;  %v3919_v23 = vadd.f32 %v978_v21, %v908_v33  ;;  %v1710_v33 = vmul.f32 0.2, %v1703_v10  ;;  %v1921_v21 = vld [vmem:[%s4208_s7 + $0xc0] sm:$0xff]  ;;  %2045 = vlog2.f32 %v1786_v19 }
 0x258   :  { %2047 = vlog2.f32 %v1921_v21  ;;  %v1511_v17 = vmul.f32 1.442695, %v1504_v25  ;;  %v1917_v19 = vld [vmem:[%s4208_s7 + $0xa0] sm:$0xff] }
 0x259   :  { %1412 = vst [vmem:[#allocation4] sm:$0xff] %v1405_v22  ;;  %v1406_v13 = vmax.f32 %v3919_v23, 0.0  ;;  %2049 = vlog2.f32 %v1906_v16 }
 0x25b   :  { %1413 = vst [vmem:[#allocation4 + $0x8] sm:$0xff] %v1406_v13 }
 0x293   :  { %v1047_v28 = vpop.f32.mrf.mxu1  ;;  %v1118_v29 = vpop.f32.mrf.mxu0 }
 0x294   :  { %v1048_v34 = vadd.f32 %v1047_v28, %v815_v24  ;;  %v1579_v24 = vsub.f32 0.0, %v1566_v18  ;;  %v1907_v28 = vld [vmem:[%s4208_s7 + $0x50] sm:$0xff] }
 0x295   :  { %v1049_v35 = vpop.f32.mrf.mxu1  ;;  %v1120_v37 = vpop.f32.mrf.mxu0 }
 0x296   :  { %v3941_v14 = vadd.f32 %v1118_v29, %v1048_v34  ;;  %v1050_v36 = vadd.f32 %v1049_v35, %v819_v27  ;;  %v1711_v27 = vmul.f32 0.2, %v1704_v31  ;;  %v1580_v29 = vsub.f32 0.0, %v1568_v20  ;;  %v2034_v35 = vpop.eup %2033 }
 0x297   :  { %v1717_v34 = vmul.f32 1.442695, %v1710_v33  ;;  %2051 = vlog2.f32 %v1579_v24  ;;  %v2036_v41 = vpop.eup %2035  ;;  %v1467_v43 = vmul.f32 0.6931472, %v2034_v35 }
 0x298   :  { %v1407_v38 = vmax.f32 %v3941_v14, 0.0  ;;  %v3944_v39 = vadd.f32 %v1120_v37, %v1050_v36  ;;  %v1915_v36 = vld [vmem:[%s4208_s7 + $0x90] sm:$0xff]  ;;  %v1673_v37 = vmul.f32 0.6931472, %v2032_v26  ;;  %2053 = vlog2.f32 %v1907_v28  ;;  %v2038_v45 = vpop.eup %2037 }
 0x299   :  { %v1719_v42 = vmul.f32 1.442695, %v1711_v27  ;;  %2055 = vlog2.f32 %v1580_v29  ;;  %v1675_v46 = vmul.f32 0.6931472, %v2036_v41  ;;  %v2040_v49 = vpop.eup %2039  ;;  %v1478_v52 = vsub.f32 0.0, %v1467_v43  ;;  %v1461_v27 = vld [vmem:[%s4208_s7 + $0x30] sm:$0xff] }
 0x29a   :  { %1414 = vst [vmem:[#allocation4 + $0x10] sm:$0xff] %v1407_v38  ;;  %v1408_v40 = vmax.f32 %v3944_v39, 0.0  ;;  %2057 = vpow2.f32 %v1717_v34  ;;  %v1684_v47 = vsub.f32 0.0, %v1673_v37  ;;  %v2042_v50 = vpop.eup %2041  ;;  %v1469_v56 = vmul.f32 0.6931472, %v2040_v49  ;;  %v1924_v37 = vld [vmem:[%s4208_s7 + $0xd8] sm:$0xff] }
 0x29b   :  { %2059 = vlog2.f32 %v1915_v36  ;;  %v2044_v53 = vpop.eup %2043  ;;  %v1685_v55 = vsub.f32 0.0, %v1675_v46  ;;  %v1486_v57 = vmul.f32 0.6931472, %v2038_v45  ;;  %v1793_v61 = vmul.f32 0.6931472, %v2042_v50 }
 0x29c   :  { %1415 = vst [vmem:[#allocation4 + $0x18] sm:$0xff] %v1408_v40  ;;  %2061 = vpow2.f32 %v1511_v17  ;;  %v2046_v59 = vpop.eup %2045  ;;  %v1776_v0 = vmul.f32 0.6931472, %v2044_v53  ;;  %v1479_v5 = vsub.f32 0.0, %v1469_v56 }
 0x29d   :  { %2063 = vpow2.f32 %v1719_v42  ;;  %v2048_v62 = vpop.eup %2047  ;;  %v1498_v6 = vsub.f32 0.0, %v1486_v57  ;;  %v1806_v10 = vsub.f32 0.0, %v1793_v61  ;;  %v1795_v24 = vmul.f32 0.6931472, %v2046_v59 }
 0x29e   :  { %2065 = vlog2.f32 %v1916_v44  ;;  %v2050_v1 = vpop.eup %2049  ;;  %v1778_v31 = vmul.f32 0.6931472, %v2048_v62  ;;  %v1787_v20 = vsub.f32 0.0, %v1776_v0  ;;  %v1910_v44 = vld [vmem:[%s4208_s7 + $0x68] sm:$0xff]  ;;  %s2259_s7 = smov [#allocation4]  }
 0x29f   :  { %2067 = vlog2.f32 %v1459_v48  ;;  %v1570_v33 = vmul.f32 0.6931472, %v2050_v1  ;;  %v1505_v28 = vmul.f32 0.2, %v1498_v6  ;;  %v1813_v17 = vmul.f32 0.2, %v1806_v10 }
 0x2a0   :  { %2069 = vlog2.f32 %v1684_v47  ;;  %v1788_v43 = vsub.f32 0.0, %v1778_v31  ;;  %s1889_s5 = sshll.u32 %s2259_s7, 4  ;;  %s1890_s5 = int_to_ptr.vmem [resolvable:$true] %s1889_s5 }
 0x2a1   :  { %2071 = vlog2.f32 %v1460_v51  ;;  %v1581_v45 = vsub.f32 0.0, %v1570_v33  ;;  %v1513_v56 = vmul.f32 1.442695, %v1505_v28  ;;  %v1820_v59 = vmul.f32 1.442695, %v1813_v17  ;;  %s2213_s6 = scalar_lea.vmem %s1890_s5, 896  ;;  %p2218_p1 = scmp.lt.s32.totalorder %s1890_s5, %s1890_s5 }
 0x2a2   :  { %2073 = vlog2.f32 %v1478_v52  ;;  %v1807_v52 = vsub.f32 0.0, %v1795_v24  ;;  %p2214_p0 = scmp.ne.s32.totalorder %s1890_s5, %s2213_s6  ;;  %p2219_p2 = scmp.lt.s32.totalorder %s2213_s6, %s2213_s6 }
 0x2a3   :  { %2075 = vlog2.f32 %v1922_v58 }
 0x2a4   :  { %v2052_v4 = vpop.eup %2051  ;;  %2077 = vlog2.f32 %v1685_v55  ;;  %v1814_v1 = vmul.f32 0.2, %v1807_v52  ;;  %p2220_p3 = por %p2219_p2, %p2218_p1 }
 0x2a5   :  { %v2054_v8 = vpop.eup %2053  ;;  %2079 = vlog2.f32 %v1923_v63  ;;  %v1587_v46 = vmul.f32 0.6931472, %v2052_v4 }
 0x2a6   :  { %v4018_v15 = vpop.eup %2055  ;;  %2081 = vlog2.f32 %v1908_v3  ;;  %v1572_v29 = vmul.f32 0.6931472, %v2054_v8  ;;  %p2221_p4 = pnand %p2220_p3, %p2214_p0 }
 0x2a7   :  { %v4023_v21 = vpop.eup %2057  ;;  %2083 = vlog2.f32 %v1909_v7  ;;  %v1600_v60 = vsub.f32 0.0, %v1587_v46 }
 0x2a8   :  { %v2060_v25 = vpop.eup %2059  ;;  %2085 = vlog2.f32 %v1479_v5  ;;  %v1582_v53 = vsub.f32 0.0, %v1572_v29 }
 0x2a9   :  { %v4028_v34 = vpop.eup %2061  ;;  %2087 = vlog2.f32 %v1917_v19  ;;  %v1677_v50 = vmul.f32 0.6931472, %v2060_v25  ;;  %v1607_v6 = vmul.f32 0.2, %v1600_v60 }
 0x2aa   :  { %v4035_v41 = vpop.eup %2063  ;;  %2089 = vlog2.f32 %v1787_v20  ;;  %v1589_v20 = vmul.f32 0.6931472, %v4018_v15 }
 0x2ab   :  { %v2066_v47 = vpop.eup %2065  ;;  %2091 = vlog2.f32 %v1461_v27  ;;  %v1686_v62 = vsub.f32 0.0, %v1677_v50  ;;  %v1614_v25 = vmul.f32 1.442695, %v1607_v6 }
 0x2ac   :  { %v2068_v51 = vpop.eup %2067  ;;  %2093 = vlog2.f32 %v1924_v37  ;;  %v1679_v58 = vmul.f32 0.6931472, %v2066_v47 }
 0x2ad   :  { %v2070_v54 = vpop.eup %2069  ;;  %2095 = vlog2.f32 %v1910_v44  ;;  %v1471_v63 = vmul.f32 0.6931472, %v2068_v51 }
 0x2ae   :  { %v2072_v57 = vpop.eup %2071  ;;  %2097 = vlog2.f32 %v1788_v43  ;;  %v1687_v5 = vsub.f32 0.0, %v1679_v58 }
 0x2af   :  { %v2074_v61 = vpop.eup %2073  ;;  %2099 = vlog2.f32 %v1581_v45  ;;  %v1473_v3 = vmul.f32 0.6931472, %v2072_v57  ;;  %v1480_v8 = vsub.f32 0.0, %v1471_v63 }
 0x2b0   :  { %v2076_v0 = vpop.eup %2075  ;;  %2101 = vlog2.f32 %v1582_v53  ;;  %v1488_v29 = vmul.f32 0.6931472, %v2074_v61 }
 0x2b1   :  { %2103 = vpow2.f32 %v1513_v56  ;;  %v1481_v19 = vsub.f32 0.0, %v1473_v3 }
 0x2b2   :  { %2105 = vpow2.f32 %v1820_v59  ;;  %v1499_v51 = vsub.f32 0.0, %v1488_v29 }
 0x2b3   :  { %2107 = vlog2.f32 %v1686_v62 }
 0x2d5   :  { %v1189_v18 = vpop.f32.mrf.mxu1  ;;  %v1260_v30 = vpop.f32.mrf.mxu0 }
 0x2d6   :  { %v1190_v16 = vadd.f32 %v1189_v18, %v823_v2  ;;  %v2078_v2 = vpop.eup %2077  ;;  %2109 = vlog2.f32 %v1405_v22  ;;  %v1822_v18 = vmul.f32 1.442695, %v1814_v1  ;;  %v1506_v1 = vmul.f32 0.2, %v1499_v51 }
 0x2d7   :  { %v1191_v26 = vpop.f32.mrf.mxu1  ;;  %v1262_v42 = vpop.f32.mrf.mxu0  ;;  %v1696_v22 = vmul.f32 0.6931472, %v2078_v2 }
 0x2d8   :  { %v4030_v35 = vadd.f32 %v1260_v30, %v1190_v16  ;;  %v1192_v36 = vadd.f32 %v1191_v26, %v827_v9  ;;  %v2080_v4 = vpop.eup %2079  ;;  %v1780_v9 = vmul.f32 0.6931472, %v2076_v0  ;;  %2111 = vlog2.f32 %v1406_v13 }
 0x2d9   :  { %v2082_v7 = vpop.eup %2081  ;;  %v1782_v31 = vmul.f32 0.6931472, %v2080_v4  ;;  %v1694_v16 = vmul.f32 0.6931472, %v2070_v54  ;;  %2113 = vlog2.f32 %v1687_v5  ;;  %v1706_v50 = vsub.f32 0.0, %v1696_v22 }
 0x2da   :  { %v1409_v48 = vmax.f32 %v4030_v35, 0.0  ;;  %v4041_v49 = vadd.f32 %v1262_v42, %v1192_v36  ;;  %v2084_v10 = vpop.eup %2083  ;;  %v1574_v24 = vmul.f32 0.6931472, %v2082_v7  ;;  %2115 = vlog2.f32 %v1480_v8 }
 0x2db   :  { %v2086_v30 = vpop.eup %2085  ;;  %v1789_v27 = vsub.f32 0.0, %v1780_v9  ;;  %v1576_v28 = vmul.f32 0.6931472, %v2084_v10  ;;  %2117 = vpow2.f32 %v1822_v18  ;;  %v1790_v13 = vsub.f32 0.0, %v1782_v31 }
 0x2dc   :  { %1416 = vst [vmem:[#allocation4 + $0x20] sm:$0xff] %v1409_v48  ;;  %v1410_v55 = vmax.f32 %v4041_v49, 0.0  ;;  %v2088_v33 = vpop.eup %2087  ;;  %2119 = vlog2.f32 %v1481_v19  ;;  %v1705_v17 = vsub.f32 0.0, %v1694_v16  ;;  %v1583_v15 = vsub.f32 0.0, %v1574_v24 }
 0x2dd   :  { %v2090_v26 = vpop.eup %2089  ;;  %v1681_v23 = vmul.f32 0.6931472, %v2088_v33  ;;  %v1601_v42 = vsub.f32 0.0, %v1589_v20  ;;  %2121 = vpow2.f32 %v1614_v25  ;;  %v1490_v45 = vmul.f32 0.6931472, %v2086_v30 }
 0x2de   :  { %1417 = vst [vmem:[#allocation4 + $0x28] sm:$0xff] %v1410_v55  ;;  %v2092_v32 = vpop.eup %2091  ;;  %2123 = vlog2.f32 %v1789_v27  ;;  %v1584_v46 = vsub.f32 0.0, %v1576_v28  ;;  %v1797_v56 = vmul.f32 0.6931472, %v2090_v26  ;;  %v1712_v59 = vmul.f32 0.2, %v1705_v17 }
 0x2df   :  { %v2094_v36 = vpop.eup %2093  ;;  %v1475_v44 = vmul.f32 0.6931472, %v2092_v32  ;;  %2125 = vlog2.f32 %v1407_v38  ;;  %v1688_v54 = vsub.f32 0.0, %v1681_v23  ;;  %v1608_v61 = vmul.f32 0.2, %v1601_v42 }
 0x2e0   :  { %v2096_v37 = vpop.eup %2095  ;;  %v1784_v52 = vmul.f32 0.6931472, %v2094_v36  ;;  %2127 = vlog2.f32 %v1790_v13  ;;  %v1500_v0 = vsub.f32 0.0, %v1490_v45  ;;  %v1713_v5 = vmul.f32 0.2, %v1706_v50 }
 0x2e1   :  { %v2098_v43 = vpop.eup %2097  ;;  %v1578_v57 = vmul.f32 0.6931472, %v2096_v37  ;;  %2129 = vlog2.f32 %v1583_v15  ;;  %v1482_v63 = vsub.f32 0.0, %v1475_v44  ;;  %v1808_v6 = vsub.f32 0.0, %v1797_v56 }
 0x2e2   :  { %v2100_v47 = vpop.eup %2099  ;;  %v1799_v60 = vmul.f32 0.6931472, %v2098_v43  ;;  %2131 = vlog2.f32 %v1584_v46  ;;  %v1791_v2 = vsub.f32 0.0, %v1784_v52  ;;  %v1721_v9 = vmul.f32 1.442695, %v1712_v59 }
 0x2e3   :  { %v2102_v53 = vpop.eup %2101  ;;  %v1591_v14 = vmul.f32 0.6931472, %v2100_v47  ;;  %2133 = vlog2.f32 %v1408_v40  ;;  %v1585_v7 = vsub.f32 0.0, %v1578_v57  ;;  %v1616_v18 = vmul.f32 1.442695, %v1608_v61 }
 0x2e4   :  { %v4055_v58 = vpop.eup %2103  ;;  %v1593_v3 = vmul.f32 0.6931472, %v2102_v53  ;;  %2135 = vlog2.f32 %v1688_v54  ;;  %v1809_v10 = vsub.f32 0.0, %v1799_v60  ;;  %v1507_v39 = vmul.f32 0.2, %v1500_v0 }
 0x2e5   :  { %v4057_v62 = vpop.eup %2105  ;;  %2137 = vlog2.f32 %v1409_v48  ;;  %v1602_v40 = vsub.f32 0.0, %v1591_v14  ;;  %v1515_v33 = vmul.f32 1.442695, %v1506_v1  ;;  %v830_v25 = vsub.s32 6, %v2910_v12 }
 0x2e6   :  { %v2108_v38 = vpop.eup %2107  ;;  %2139 = vlog2.f32 %v1482_v63  ;;  %v1603_v16 = vsub.f32 0.0, %v1593_v3  ;;  %v1723_v26 = vmul.f32 1.442695, %v1713_v5  ;;  %v1815_v35 = vmul.f32 0.2, %v1808_v6 }
 0x2e7   :  { %v2110_v4 = vpop.eup %2109  ;;  %v1698_v19 = vmul.f32 0.6931472, %v2108_v38  ;;  %2141 = vlog2.f32 %v1791_v2  ;;  %v1816_v32 = vmul.f32 0.2, %v1809_v10  ;;  %v1609_v23 = vmul.f32 0.2, %v1602_v40 }
 0x2e8   :  { %v2112_v8 = vpop.eup %2111  ;;  %v1421_v20 = vmul.f32 0.6931472, %v2110_v4  ;;  %2143 = vlog2.f32 %v1585_v7  ;;  %v1517_v15 = vmul.f32 1.442695, %v1507_v39  ;;  %v1610_v42 = vmul.f32 0.2, %v1603_v16 }
 0x2e9   :  { %v2114_v30 = vpop.eup %2113  ;;  %v1423_v27 = vmul.f32 0.6931472, %v2112_v8  ;;  %2145 = vlog2.f32 %v1410_v55  ;;  %v1707_v29 = vsub.f32 0.0, %v1698_v19  ;;  %v831_v44 = vrot.slane %v3908_v11, %v830_v25 }
 0x2ea   :  { %v2116_v31 = vpop.eup %2115  ;;  %v1700_v28 = vmul.f32 0.6931472, %v2114_v30  ;;  %2147 = vpow2.f32 %v1616_v18  ;;  %v1434_v37 = vmul.f32 0.2, %v1421_v20  ;;  %v1824_v55 = vmul.f32 1.442695, %v1815_v35 }
 0x2eb   :  { %v4063_v24 = vpop.eup %2117  ;;  %v1492_v36 = vmul.f32 0.6931472, %v2116_v31  ;;  %2149 = vpow2.f32 %v1721_v9  ;;  %v1435_v46 = vmul.f32 0.2, %v1423_v27  ;;  %v1826_v52 = vmul.f32 1.442695, %v1816_v32 }
 0x2ec   :  { %v2120_v48 = vpop.eup %2119  ;;  %2151 = vpow2.f32 %v1515_v33  ;;  %v1708_v51 = vsub.f32 0.0, %v1700_v28  ;;  %v1714_v56 = vmul.f32 0.2, %v1707_v29  ;;  %v1618_v59 = vmul.f32 1.442695, %v1609_v23 }
 0x2ed   :  { %v4068_v22 = vpop.eup %2121  ;;  %v1494_v49 = vmul.f32 0.6931472, %v2120_v48  ;;  %2153 = vpow2.f32 %v1723_v26  ;;  %v1501_v57 = vsub.f32 0.0, %v1492_v36  ;;  %v1441_v61 = vmul.f32 1.442695, %v1434_v37 }
 0x2ee   :  { %v2124_v13 = vpop.eup %2123  ;;  %2155 = vpow2.f32 %v1517_v15  ;;  %v1620_v11 = vmul.f32 1.442695, %v1610_v42  ;;  %v1443_v4 = vmul.f32 1.442695, %v1435_v46  ;;  %v1715_v5 = vmul.f32 0.2, %v1708_v51 }
 0x2ef   :  { %v2126_v43 = vpop.eup %2125  ;;  %v1502_v1 = vsub.f32 0.0, %v1494_v49  ;;  %v1801_v2 = vmul.f32 0.6931472, %v2124_v13  ;;  %2157 = vpow2.f32 %v1824_v55  ;;  %v1725_v9 = vmul.f32 1.442695, %v1714_v56 }
 0x2f0   :  { %v2128_v45 = vpop.eup %2127  ;;  %v1425_v63 = vmul.f32 0.6931472, %v2126_v43  ;;  %v1508_v10 = vmul.f32 0.2, %v1501_v57  ;;  %2159 = vpow2.f32 %v1826_v52  ;;  %v1727_v35 = vmul.f32 1.442695, %v1715_v5 }
 0x2f1   :  { %v2130_v53 = vpop.eup %2129  ;;  %v1803_v6 = vmul.f32 0.6931472, %v2128_v45  ;;  %v1509_v33 = vmul.f32 0.2, %v1502_v1  ;;  %v1810_v16 = vsub.f32 0.0, %v1801_v2  ;;  %2161 = vpow2.f32 %v1618_v59 }
 0x2f2   :  { %v2132_v60 = vpop.eup %2131  ;;  %v1595_v18 = vmul.f32 0.6931472, %v2130_v53  ;;  %v1436_v19 = vmul.f32 0.2, %v1425_v63  ;;  %v1519_v32 = vmul.f32 1.442695, %v1508_v10 }
 0x2f3   :  { %v2134_v0 = vpop.eup %2133  ;;  %v1811_v48 = vsub.f32 0.0, %v1803_v6  ;;  %v1817_v15 = vmul.f32 0.2, %v1810_v16  ;;  %v1597_v55 = vmul.f32 0.6931472, %v2132_v60 }
 0x2f4   :  { %v2136_v3 = vpop.eup %2135  ;;  %v1427_v39 = vmul.f32 0.6931472, %v2134_v0  ;;  %v1604_v29 = vsub.f32 0.0, %v1595_v18  ;;  %v1445_v23 = vmul.f32 1.442695, %v1436_v19 }
 0x2f5   :  { %v2138_v7 = vpop.eup %2137  ;;  %v1702_v20 = vmul.f32 0.6931472, %v2136_v3  ;;  %v1828_v57 = vmul.f32 1.442695, %v1817_v15  ;;  %v1605_v60 = vsub.f32 0.0, %v1597_v55 }
 0x2f6   :  { %v2140_v30 = vpop.eup %2139  ;;  %v1429_v26 = vmul.f32 0.6931472, %v2138_v7  ;;  %v1437_v13 = vmul.f32 0.2, %v1427_v39  ;;  %v1611_v53 = vmul.f32 0.2, %v1604_v29 }
 0x2f7   :  { %v1960_v17 = vpop.f32.mrf.mxu1  ;;  %v1995_v12 = vpop.f32.mrf.mxu0  ;;  %v1496_v28 = vmul.f32 0.6931472, %v2140_v30  ;;  %v1612_v6 = vmul.f32 0.2, %v1605_v60 }
 0x2f8   :  { %v2142_v40 = vpop.eup %2141  ;;  %v1447_v51 = vmul.f32 1.442695, %v1437_v13  ;;  %v1622_v1 = vmul.f32 1.442695, %v1611_v53 }
 0x2f9   :  { %v1961_v47 = vpop.f32.mrf.mxu1  ;;  %v1996_v50 = vpop.f32.mrf.mxu0  ;;  %v1805_v37 = vmul.f32 0.6931472, %v2142_v40  ;;  %v1503_v46 = vsub.f32 0.0, %v1496_v28  ;;  %v1624_v40 = vmul.f32 1.442695, %v1612_v6 }
 0x2fa   :  { %v1962_v54 = vadd.f32 %v1961_v47, %v1960_v17  ;;  %v1997_v38 = vadd.f32 %v1996_v50, %v1995_v12  ;;  %v2144_v25 = vpop.eup %2143  ;;  %v1709_v12 = vsub.f32 0.0, %v1702_v20  ;;  %v1521_v47 = vmul.f32 1.442695, %v1509_v33 }
 0x2fb   :  { %v2146_v27 = vpop.eup %2145  ;;  %v1599_v42 = vmul.f32 0.6931472, %v2144_v25  ;;  %v1818_v50 = vmul.f32 0.2, %v1811_v48  ;;  %v1812_v52 = vsub.f32 0.0, %v1805_v37 }
 0x2fc   :  { %v1332_v14 = vadd.f32 %v1962_v54, %v831_v44  ;;  %v4072_v36 = vpop.eup %2147  ;;  %v1438_v44 = vmul.f32 0.2, %v1429_v26  ;;  %v1431_v49 = vmul.f32 0.6931472, %v2146_v27  ;;  %v1716_v56 = vmul.f32 0.2, %v1709_v12 }
 0x2fd   :  { %v4074_v17 = vpop.eup %2149  ;;  %v1606_v59 = vsub.f32 0.0, %v1599_v42  ;;  %v1510_v0 = vmul.f32 0.2, %v1503_v46 }
 0x2fe   :  { %v1402_v8 = vadd.f32 %v1997_v38, %v1332_v14  ;;  %v4076_v43 = vpop.eup %2151  ;;  %v1439_v63 = vmul.f32 0.2, %v1431_v49  ;;  %v1830_v14 = vmul.f32 1.442695, %v1818_v50  ;;  %v1819_v38 = vmul.f32 0.2, %v1812_v52 }
 0x2ff   :  { %v4078_v45 = vpop.eup %2153  ;;  %v1729_v3 = vmul.f32 1.442695, %v1716_v56 }
 0x300   :  { %v1411_v31 = vmax.f32 %v1402_v8, 0.0  ;;  %v4080_v54 = vpop.eup %2155  ;;  %v1451_v5 = vmul.f32 1.442695, %v1439_v63  ;;  %v1523_v8 = vmul.f32 1.442695, %v1510_v0 }
 0x301   :  { %v1832_v10 = vmul.f32 1.442695, %v1819_v38 }
 0x302   :  { %1419 = vst.msk [vmem:[#allocation4 + $0x30] sm:$0xff] %vm1418_vm3, %v1411_v31  ;;  %2163 = vlog2.f32 %v1411_v31 }
 0x303   :  { %2165 = vpow2.f32 %v1620_v11  ;;  %v2158_v11 = vpop.eup %2157 }
 0x304   :  { %2167 = vpow2.f32 %v1441_v61  ;;  %v1449_v61 = vmul.f32 1.442695, %v1438_v44  ;;  %v2160_v2 = vpop.eup %2159 }
 0x305   :  { %2169 = vpow2.f32 %v1443_v4  ;;  %v1613_v4 = vmul.f32 0.2, %v1606_v59  ;;  %v2162_v7 = vpop.eup %2161 }
 0x306   :  { %2171 = vpow2.f32 %v1725_v9 }
 0x307   :  { %2173 = vpow2.f32 %v1445_v23  ;;  %v1626_v19 = vmul.f32 1.442695, %v1613_v4 }
 0x308   :  { %2175 = vpow2.f32 %v1727_v35 }
 0x309   :  { %2177 = vpow2.f32 %v1519_v32 }
 0x30a   :  { %2179 = vpow2.f32 %v1521_v47 }
 0x30b   :  { %2181 = vpow2.f32 %v1447_v51 }
 0x30c   :  { %2183 = vpow2.f32 %v1828_v57 }
 0x30d   :  { %2185 = vpow2.f32 %v1449_v61 }
 0x30e   :  { %2187 = vpow2.f32 %v1830_v14 }
 0x30f   :  { %v2164_v9 = vpop.eup %2163  ;;  %2189 = vpow2.f32 %v1622_v1 }
 0x310   :  { %v2166_v18 = vpop.eup %2165  ;;  %v1433_v30 = vmul.f32 0.6931472, %v2164_v9  ;;  %2191 = vpow2.f32 %v1729_v3 }
 0x311   :  { %v2168_v39 = vpop.eup %2167  ;;  %2193 = vpow2.f32 %v1451_v5 }
 0x312   :  { %v2170_v31 = vpop.eup %2169  ;;  %v1440_v20 = vmul.f32 0.2, %v1433_v30  ;;  %2195 = vpow2.f32 %v1523_v8  ;;  %v4092_v29 = vmul.f32 %v2168_v39, %v4023_v21  ;;  %v4098_v13 = vmul.f32 %v2168_v39, %v4028_v34 }
 0x313   :  { %v2172_v33 = vpop.eup %2171  ;;  %2197 = vpow2.f32 %v1832_v10  ;;  %v4083_v35 = vmul.f32 %v2170_v31, %v4035_v41  ;;  %v4086_v48 = vmul.f32 %v2170_v31, %v4055_v58  ;;  %v4089_v28 = vmul.f32 %v2170_v31, %v4063_v24 }
 0x314   :  { %v2174_v16 = vpop.eup %2173  ;;  %v1453_v25 = vmul.f32 1.442695, %v1440_v20  ;;  %2199 = vpow2.f32 %v1626_v19  ;;  %v4104_v37 = vmul.f32 %v2168_v39, %v4057_v62  ;;  %v4113_v15 = vmul.f32 %v2170_v31, %v4072_v36 }
 0x315   :  { %v2176_v26 = vpop.eup %2175  ;;  %2201 = vpow2.f32 %v1624_v40  ;;  %v4095_v23 = vmul.f32 %v2174_v16, %v4074_v17  ;;  %v4101_v41 = vmul.f32 %v2174_v16, %v4076_v43  ;;  %v4106_v12 = vmul.f32 %v2174_v16, %v2158_v11 }
 0x316   :  { %v2178_v27 = vpop.eup %2177  ;;  %2203 = vpow2.f32 %v1453_v25  ;;  %v1738_v21 = vadd.f32 %v4083_v35, %v4092_v29  ;;  %v1532_v17 = vadd.f32 %v4086_v48, %v4098_v13  ;;  %v1841_v42 = vadd.f32 %v4089_v28, %v4104_v37 }
 0x317   :  { %v2180_v32 = vpop.eup %2179  ;;  %v4118_v43 = vmul.f32 %v2168_v39, %v4068_v22  ;;  %v4120_v62 = vmul.f32 %v2174_v16, %v2162_v7 }
 0x318   :  { %v2182_v58 = vpop.eup %2181  ;;  %v1739_v55 = vadd.f32 %v1738_v21, %v4095_v23  ;;  %v1533_v36 = vadd.f32 %v1532_v17, %v4101_v41  ;;  %v1842_v51 = vadd.f32 %v1841_v42, %v4106_v12 }
 0x319   :  { %v2184_v24 = vpop.eup %2183  ;;  %v4123_v49 = vmul.f32 %v2182_v58, %v4078_v45  ;;  %v4127_v46 = vmul.f32 %v2182_v58, %v4080_v54  ;;  %v4130_v50 = vmul.f32 %v2182_v58, %v2160_v2  ;;  %v1635_v45 = vadd.f32 %v4113_v15, %v4118_v43 }
 0x31a   :  { %v2186_v34 = vpop.eup %2185  ;;  %v4139_v57 = vmul.f32 %v2182_v58, %v2166_v18 }
 0x31b   :  { %v2188_v44 = vpop.eup %2187  ;;  %v4133_v52 = vmul.f32 %v2186_v34, %v2172_v33  ;;  %v4135_v53 = vmul.f32 %v2186_v34, %v2178_v27  ;;  %v1740_v59 = vadd.f32 %v1739_v55, %v4123_v49  ;;  %v1534_v61 = vadd.f32 %v1533_v36, %v4127_v46 }
 0x31c   :  { %v2190_v47 = vpop.eup %2189  ;;  %v4143_v63 = vmul.f32 %v2186_v34, %v2184_v24  ;;  %v1636_v60 = vadd.f32 %v1635_v45, %v4120_v62  ;;  %v1843_v0 = vadd.f32 %v1842_v51, %v4130_v50 }
 0x31d   :  { %v2192_v22 = vpop.eup %2191  ;;  %v4147_v14 = vmul.f32 %v2190_v47, %v2186_v34  ;;  %v1741_v2 = vadd.f32 %v1740_v59, %v4133_v52  ;;  %v1535_v4 = vadd.f32 %v1534_v61, %v4135_v53 }
 0x31e   :  { %v2194_v56 = vpop.eup %2193  ;;  %v1844_v8 = vadd.f32 %v1843_v0, %v4143_v63  ;;  %v1637_v9 = vadd.f32 %v1636_v60, %v4139_v57 }
 0x31f   :  { %v2196_v54 = vpop.eup %2195  ;;  %v4149_v1 = vmul.f32 %v2194_v56, %v2176_v26  ;;  %v1530_v3 = vmul.f32 %v2194_v56, %v2180_v32  ;;  %v4153_v7 = vmul.f32 %v2194_v56, %v2188_v44 }
 0x320   :  { %v2198_v11 = vpop.eup %2197  ;;  %v1638_v20 = vadd.f32 %v1637_v9, %v4147_v14 }
 0x321   :  { %v2200_v38 = vpop.eup %2199  ;;  %v1742_v39 = vadd.f32 %v1741_v2, %v4149_v1  ;;  %v1536_v40 = vadd.f32 %v1535_v4, %v1530_v3  ;;  %v1845_v58 = vadd.f32 %v1844_v8, %v4153_v7 }
 0x322   :  { %v2202_v5 = vpop.eup %2201 }
 0x323   :  { %v2204_v6 = vpop.eup %2203  ;;  %v1633_v31 = vmul.f32 %v2202_v5, %v2194_v56 }
 0x324   :  { %v1737_v10 = vmul.f32 %v2204_v6, %v2192_v22  ;;  %v1531_v18 = vmul.f32 %v2204_v6, %v2196_v54  ;;  %v4157_v30 = vmul.f32 %v2204_v6, %v2198_v11  ;;  %v4159_v19 = vmul.f32 %v2204_v6, %v2200_v38 }
 0x325   :  { %v1639_v24 = vadd.f32 %v1638_v20, %v1633_v31 }
 0x326   :  { %v1743_v33 = vsel %vm1418_vm3, %v1737_v10, 0.0  ;;  %v1537_v16 = vsel %vm1418_vm3, %v1531_v18, 0.0  ;;  %v1846_v27 = vsel %vm1418_vm3, %v4157_v30, 0.0  ;;  %v1640_v32 = vsel %vm1418_vm3, %v4159_v19, 0.0 }
 0x327   :  { %v1744_v25 = vadd.f32 %v1743_v33, %v1742_v39  ;;  %v1538_v26 = vadd.f32 %v1537_v16, %v1536_v40  ;;  %v1847_v21 = vadd.f32 %v1846_v27, %v1845_v58  ;;  %v1641_v17 = vadd.f32 %v1640_v32, %v1639_v24 }
 0x329   :  { %1745 = vadd.xlane.f32.xlu1 %v1744_v25  ;;  %1539 = vadd.xlane.f32.xlu0 %v1538_v26 }
 0x32d   :  { %1848 = vadd.xlane.f32.xlu1 %v1847_v21  ;;  %1642 = vadd.xlane.f32.xlu0 %v1641_v17 }
 0x32e   :  { %2224 = shalt.err (!%p2221_p4)
}
 0x32f   :  { %1892 = dma.vmem_to_hbm [thread:$0]  %s1890_s5, 896, %s4210_s9, [#allocation5]  }
 0x330   :  { %s2260_s9 = smov [#allocation2]  }
 0x331   :  { %s1879_s30 = sshll.u32 %s2260_s9, 4  ;;  %s1880_s30 = int_to_ptr.vmem [resolvable:$true] %s1879_s30 }
 0x332   :  { %s2233_s10 = scalar_lea.vmem %s1880_s30, 896  ;;  %p2238_p6 = scmp.lt.s32.totalorder %s1880_s30, %s1880_s30 }
 0x333   :  { %p2234_p5 = scmp.ne.s32.totalorder %s1880_s30, %s2233_s10  ;;  %p2239_p7 = scmp.lt.s32.totalorder %s2233_s10, %s2233_s10 }
 0x335   :  { %p2240_p8 = por %p2239_p7, %p2238_p6 }
 0x337   :  { %p2241_p9 = pnand %p2240_p8, %p2234_p5 }
 0x3b2   :  { %v1746_v34 = vpop.xlane.xlu1 %1745  ;;  %v1540_v42 = vpop.xlane.xlu0 %1539 }
 0x3b3   :  { %2205 = vrcp.f32 %v1746_v34 }
 0x3b4   :  { %2207 = vrcp.f32 %v1540_v42 }
 0x3b6   :  { %v1849_v44 = vpop.xlane.xlu1 %1848  ;;  %v1643_v55 = vpop.xlane.xlu0 %1642 }
 0x3b7   :  { %2209 = vrcp.f32 %v1849_v44 }
 0x3b8   :  { %2211 = vrcp.f32 %v1643_v55 }
 0x3c0   :  { %v2206_v36 = vpop.eup %2205 }
 0x3c1   :  { %v2208_v47 = vpop.eup %2207  ;;  %v1749_v51 = vmul.f32 %v2206_v36, %v4092_v29  ;;  %v1750_v22 = vmul.f32 %v2206_v36, %v4083_v35  ;;  %v1751_v54 = vmul.f32 %v2206_v36, %v4095_v23  ;;  %v1752_v59 = vmul.f32 %v2206_v36, %v4123_v49 }
 0x3c2   :  { %v1543_v45 = vmul.f32 %v2208_v47, %v4098_v13  ;;  %v1544_v56 = vmul.f32 %v2208_v47, %v4086_v48  ;;  %v1545_v61 = vmul.f32 %v2208_v47, %v4101_v41  ;;  %v1546_v60 = vmul.f32 %v2208_v47, %v4127_v46 }
 0x3c3   :  { %v1547_v11 = vmul.f32 %v2208_v47, %v4135_v53  ;;  %v1548_v0 = vmul.f32 %v2208_v47, %v1530_v3  ;;  %v1549_v2 = vmul.f32 %v2208_v47, %v1531_v18  ;;  %v1753_v29 = vmul.f32 %v2206_v36, %v4133_v52 }
 0x3c4   :  { %v2210_v38 = vpop.eup %2209  ;;  %v1754_v35 = vmul.f32 %v2206_v36, %v4149_v1  ;;  %v1755_v13 = vmul.f32 %v2206_v36, %v1737_v10 }
 0x3c5   :  { %v2212_v4 = vpop.eup %2211  ;;  %v1852_v48 = vmul.f32 %v2210_v38, %v4104_v37  ;;  %v1853_v23 = vmul.f32 %v2210_v38, %v4089_v28  ;;  %v1854_v49 = vmul.f32 %v2210_v38, %v4106_v12  ;;  %v1855_v41 = vmul.f32 %v2210_v38, %v4130_v50 }
 0x3c6   :  { %v1646_v46 = vmul.f32 %v2212_v4, %v4118_v43  ;;  %v1647_v53 = vmul.f32 %v2212_v4, %v4113_v15  ;;  %v1648_v3 = vmul.f32 %v2212_v4, %v4120_v62  ;;  %v1649_v52 = vmul.f32 %v2212_v4, %v4139_v57 }
 0x3c7   :  { %v1650_v1 = vmul.f32 %v2212_v4, %v4147_v14  ;;  %v1651_v5 = vmul.f32 %v2212_v4, %v1633_v31  ;;  %v1652_v6 = vmul.f32 %v2212_v4, %v4159_v19  ;;  %v1856_v37 = vmul.f32 %v2210_v38, %v4143_v63 }
 0x3c8   :  { %v1653_v28 = vadd.f32 %v1646_v46, %v1543_v45  ;;  %v1654_v8 = vadd.f32 %v1647_v53, %v1544_v56  ;;  %v1655_v12 = vadd.f32 %v1648_v3, %v1545_v61  ;;  %v1656_v9 = vadd.f32 %v1649_v52, %v1546_v60 }
 0x3c9   :  { %v1657_v50 = vadd.f32 %v1650_v1, %v1547_v11  ;;  %v1658_v10 = vadd.f32 %v1651_v5, %v1548_v0  ;;  %v1659_v43 = vadd.f32 %v1652_v6, %v1549_v2  ;;  %v1857_v15 = vmul.f32 %v2210_v38, %v4153_v7 }
 0x3ca   :  { %v1756_v18 = vadd.f32 %v1749_v51, %v1653_v28  ;;  %v1757_v62 = vadd.f32 %v1750_v22, %v1654_v8  ;;  %v1758_v39 = vadd.f32 %v1751_v54, %v1655_v12  ;;  %v1759_v57 = vadd.f32 %v1752_v59, %v1656_v9 }
 0x3cb   :  { %v1760_v14 = vadd.f32 %v1753_v29, %v1657_v50  ;;  %v1761_v40 = vadd.f32 %v1754_v35, %v1658_v10  ;;  %v1762_v19 = vadd.f32 %v1755_v13, %v1659_v43  ;;  %v1858_v63 = vmul.f32 %v2210_v38, %v4157_v30 }
 0x3cc   :  { %v1859_v31 = vadd.f32 %v1852_v48, %v1756_v18  ;;  %v1860_v20 = vadd.f32 %v1853_v23, %v1757_v62  ;;  %v1861_v33 = vadd.f32 %v1854_v49, %v1758_v39  ;;  %v1862_v16 = vadd.f32 %v1855_v41, %v1759_v57 }
 0x3cd   :  { %v1863_v25 = vadd.f32 %v1856_v37, %v1760_v14  ;;  %v1864_v26 = vadd.f32 %v1857_v15, %v1761_v40  ;;  %v1865_v27 = vadd.f32 %v1858_v63, %v1762_v19 }
 0x3ce   :  { %1866 = vst [vmem:[#allocation2] sm:$0xff] %v1859_v31  ;;  %1867 = vst [vmem:[#allocation2 + $0x8] sm:$0xff] %v1860_v20 }
 0x3cf   :  { %1868 = vst [vmem:[#allocation2 + $0x10] sm:$0xff] %v1861_v33  ;;  %1869 = vst [vmem:[#allocation2 + $0x18] sm:$0xff] %v1862_v16 }
 0x3d0   :  { %1870 = vst [vmem:[#allocation2 + $0x20] sm:$0xff] %v1863_v25  ;;  %1871 = vst [vmem:[#allocation2 + $0x28] sm:$0xff] %v1864_v26 }
 0x3d1   :  { %1872 = vst.msk [vmem:[#allocation2 + $0x30] sm:$0xff] %vm1418_vm3, %v1865_v27 }
 0x3d2   :  { %2244 = shalt.err (!%p2241_p9)
}
 0x3d3   :  { %1882 = dma.vmem_to_hbm [thread:$0]  %s1880_s30, 896, %s4209_s8, [#allocation3]  }
 0x3d4   :  { %2253 = dma.done.wait [#allocation3], 896  }
 0x3d5   :  { %2254 = vsyncadd [#allocation3], 4294966400 }
 0x3d6   :  { %2255 = dma.done.wait [#allocation5], 896  }
 0x3d7   :  { %2256 = vsyncadd [#allocation5], 4294966400 }
 0x3d8   :  { %1899 = vsyncpa [#allocation3], 1 }
 0x3d9   :  { %1900 = vsyncpa [#allocation5], 1 }

</bundles_post_ra>
